<compile_context>
chip_gen: v7x
topology: tpu7x:2x2x1
jax: 0.10.0
libtpu: 0.0.40
codegen_flags: <defaults>
</compile_context>

<pallas_src>
import jax
import jax.numpy as jnp
from jax import lax
from jax.experimental import pallas as pl
from jax.experimental.pallas import tpu as pltpu

K = 7            # depthwise kernel size
PAD = K // 2     # 'same' padding
EPS = 1e-5       # GroupNorm default eps
INV_SQRT2 = 0.7071067811865476


def _make_kernel(C, H, W, TOP, NPAD):
    """Build the kernel for a fixed (C, H, W) and scratch geometry."""
    HW = H * W
    ITOP = TOP * W           # lane where data row 0 starts (128-aligned for W|128)
    IEND = ITOP + HW         # end of the interior

    def kernel(x_ref, dww_ref, dwb_ref, w1_ref, b1_ref, w2_ref, out_ref, pad_ref):
        BT = x_ref.shape[0]                    # samples per grid step (static)

        # ---- params, loaded once per grid step -------------------------------
        dww = dww_ref[...]                     # (C, 49) depthwise taps
        dwb = dwb_ref[...]                     # (C, 1)  depthwise bias
        w1 = w1_ref[...]                       # (C, C)  GN gamma + 1/sqrt2 folded
        b1 = b1_ref[...]                       # (C, 1)  GN beta  + 1/sqrt2 folded
        w2 = w2_ref[...]                       # (C, C)  sqrt2/2 folded

        # Zero only the row-halo strips; the interior is fully overwritten for
        # every sample.  Done every grid step (each TC has its own scratch).
        pad_ref[:, :ITOP] = jnp.zeros((C, ITOP), jnp.float32)
        pad_ref[:, IEND:] = jnp.zeros((C, NPAD - IEND), jnp.float32)

        # Column-validity masks for the 6 off-centre column offsets (d != 0):
        # a shift by d lanes wraps row boundaries, so targets with w+d outside
        # [0, W) must be zeroed.  Precomputed once per grid step.
        lane = lax.broadcasted_iota(jnp.int32, (C, HW), 1)
        col = (lane & (W - 1)) if (W & (W - 1)) == 0 else (lane % W)
        col_ok = {}
        for j in range(K):
            d = j - PAD
            if d < 0:
                col_ok[j] = col >= (-d)
            elif d > 0:
                col_ok[j] = col < (W - d)

        zn_parts = []
        for s in range(BT):                            # static unroll (bt small)
            xf = x_ref[s]                              # (C, HW) lane-dense
            pad_ref[:, ITOP:IEND] = xf                 # aligned interior write

            # ---- depthwise 7x7, lane-dense -----------------------------------
            # tap (i, j): source lane = t + (TOP + i - PAD)*W + (j - PAD)
            acc = None
            for j in range(K):
                d = j - PAD
                part = None
                for i in range(K):
                    base = (TOP + i - PAD) * W + d
                    src = pad_ref[:, base:base + HW]   # shifted 256-lane window
                    term = dww[:, i * K + j:i * K + j + 1] * src
                    part = term if part is None else part + term
                if d != 0:
                    part = jnp.where(col_ok[j], part, 0.0)
                acc = part if acc is None else acc + part
            z = acc + dwb                              # depthwise bias

            # ---- GroupNorm(num_groups=1); affine folded into w1/b1 -----------
            mean = jnp.mean(z, keepdims=True)
            zc = z - mean
            var = jnp.mean(zc * zc, keepdims=True)     # biased var (PyTorch GN)
            zn_parts.append(zc * lax.rsqrt(var + EPS))

        # ---- both 1x1 convs batched over the bt samples (one dot each) -------
        zn = zn_parts[0] if BT == 1 else jnp.concatenate(zn_parts, axis=1)
        y = jnp.dot(w1, zn, preferred_element_type=jnp.float32) + b1
        y = y * (1.0 + lax.erf(y))                     # exact GELU, consts folded
        o = jnp.dot(w2, y, preferred_element_type=jnp.float32)

        for s in range(BT):                            # residual + lane-dense store
            out_ref[s] = o[:, s * HW:(s + 1) * HW] + x_ref[s]

    return kernel


def convnext_block(x, dw_w, dw_b, gamma, beta, w1, w2, *, bt=None):
    """x: (B, C, H, W) float32.  Returns (B, C, H, W)."""
    B, C, H, W = x.shape
    HW = H * W

    # --- scratch geometry: row-padded flat buffer (C, NPAD) -------------------
    # top halo rows: >= PAD+1 (so all tap window starts are >= 0) and, when W
    # divides 128, rounded up so the interior starts on a 128-lane boundary.
    if W <= 128 and 128 % W == 0:
        rows128 = 128 // W
        top = -(-(PAD + 1) // rows128) * rows128
    else:
        top = PAD + 1
    bot = PAD + 1                                    # covers all tap reads below
    NPAD = -(-((top + H + bot) * W) // 128) * 128    # round lanes up to 128

    # --- host-side weight folding ---------------------------------------------
    # GN affine into conv1:  w1 @ (zn*gamma + beta) = (w1*gamma) @ zn + w1@beta
    # GELU constants: scale w1/b1 by 1/sqrt(2) and w2 by sqrt(2)/2 so the kernel
    # computes y*(1+erf(y)) with no extra full-tile multiplies.
    w1f = ((w1 * gamma[None, :]) * INV_SQRT2).astype(jnp.float32)
    b1f = ((w1 @ beta).reshape(C, 1) * INV_SQRT2).astype(jnp.float32)
    w2f = (w2 * INV_SQRT2).astype(jnp.float32)
    dwwf = dw_w.reshape(C, K * K).astype(jnp.float32)
    dwbf = dw_b.reshape(C, 1).astype(jnp.float32)

    # --- samples per grid step -------------------------------------------------
    # Prefer an even grid length (keeps both v7x TensorCores busy under
    # dimension_semantics=('parallel',)); otherwise take the largest divisor.
    if bt is None:
        cap = min(B, 8)
        even = [c for c in range(1, cap + 1) if B % c == 0 and (B // c) % 2 == 0]
        anyd = [c for c in range(1, cap + 1) if B % c == 0]
        bt = max(even) if even else max(anyd)
    assert B % bt == 0, "bt must divide the batch size"

    # Lane-dense activations into/out of the kernel (free metadata reshape).
    xf = x.reshape(B, C, HW)

    out = pl.pallas_call(
        _make_kernel(C, H, W, top, NPAD),
        out_shape=jax.ShapeDtypeStruct((B, C, HW), jnp.float32),
        grid_spec=pltpu.PrefetchScalarGridSpec(
            num_scalar_prefetch=0,
            grid=(B // bt,),
            in_specs=[
                pl.BlockSpec((bt, C, HW), lambda b: (b, 0, 0)),    # x (lane-dense)
                pl.BlockSpec((C, K * K), lambda b: (0, 0)),        # dw weights
                pl.BlockSpec((C, 1), lambda b: (0, 0)),            # dw bias
                pl.BlockSpec((C, C), lambda b: (0, 0)),            # w1 (folded)
                pl.BlockSpec((C, 1), lambda b: (0, 0)),            # b1 (folded)
                pl.BlockSpec((C, C), lambda b: (0, 0)),            # w2 (folded)
            ],
            out_specs=pl.BlockSpec((bt, C, HW), lambda b: (b, 0, 0)),
            scratch_shapes=[pltpu.VMEM((C, NPAD), jnp.float32)],   # row-padded x
        ),
        compiler_params=pltpu.CompilerParams(
            dimension_semantics=("parallel",)),
    )(xf, dwwf, dwbf, w1f, b1f, w2f)

    # (B, C, H*W) -> (B, C, H, W): contiguous reshape, no data movement.
    return out.reshape(B, C, H, W)


def convnext_ref(x, dw_w, dw_b, gamma, beta, w1, w2):
    """Pure-JAX reference mirroring the PyTorch forward (un-folded affine)."""
    B, C, H, W = x.shape
    xpad = jnp.pad(x, ((0, 0), (0, 0), (PAD, PAD), (PAD, PAD)))
    z = jnp.zeros_like(x)
    for i in range(K):
        for j in range(K):
            z = z + dw_w[None, :, i, j, None, None] * xpad[:, :, i:i + H, j:j + W]
    z = z + dw_b[None, :, None, None]
    mean = jnp.mean(z, axis=(1, 2, 3), keepdims=True)
    var = jnp.mean((z - mean) ** 2, axis=(1, 2, 3), keepdims=True)
    zn = (z - mean) / jnp.sqrt(var + EPS)
    zn = zn * gamma[None, :, None, None] + beta[None, :, None, None]
    y = jnp.einsum('oc,bchw->bohw', w1, zn)
    y = jax.nn.gelu(y, approximate=False)
    y2 = jnp.einsum('oc,bchw->bohw', w2, y)
    return y2 + x


if __name__ == "__main__":
    B, C, H, W = 2, 8, 16, 16
    key = jax.random.PRNGKey(0)
    kx, kdw, kb, kg, kbe, k1, k2 = jax.random.split(key, 7)

    x = jax.random.normal(kx, (B, C, H, W), jnp.float32)

    # dw_conv: Conv2d(C, C, 7, groups=C) -> weight (C, 1, 7, 7), kaiming fan_in=49
    dw_w = jax.random.normal(kdw, (C, K, K), jnp.float32) * jnp.sqrt(2.0 / (K * K))
    dw_b = jax.random.uniform(kb, (C,), jnp.float32, minval=-1.0 / 7.0, maxval=1.0 / 7.0)
    # conv1: Conv2d(C, C, 1, bias=False) -> kaiming fan_in=C
    w1 = jax.random.normal(k1, (C, C), jnp.float32) * jnp.sqrt(2.0 / C)
    # conv2: the module zero-inits this weight (output would equal x);
    # use small nonzero values so the full path is exercised.
    w2 = jax.random.normal(k2, (C, C), jnp.float32) * 0.1
    # GroupNorm affine defaults are ones/zeros; randomize slightly so the
    # host-side gamma/beta folding is actually exercised against the reference.
    gamma = 1.0 + 0.1 * jax.random.normal(kg, (C,), jnp.float32)
    beta = 0.1 * jax.random.normal(kbe, (C,), jnp.float32)

    out = convnext_block(x, dw_w, dw_b, gamma, beta, w1, w2)
    out = jax.block_until_ready(out)

    ref = convnext_ref(x, dw_w, dw_b, gamma, beta, w1, w2)
    assert out.shape == (B, C, H, W)
    max_err = float(jnp.max(jnp.abs(out - ref)))
    assert jnp.allclose(out, ref, rtol=1e-4, atol=1e-4), max_err

    print("KERNEL_OK")
</pallas_src>

<mosaic_0001>
module attributes {stable_mosaic.version = 11 : i64} {
  func.func @kernel(%arg0: i32, %arg1: memref<1x8x256xf32, #tpu.memory_space<vmem>>, %arg2: memref<8x49xf32, #tpu.memory_space<vmem>>, %arg3: memref<8x1xf32, #tpu.memory_space<vmem>>, %arg4: memref<8x8xf32, #tpu.memory_space<vmem>>, %arg5: memref<8x1xf32, #tpu.memory_space<vmem>>, %arg6: memref<8x8xf32, #tpu.memory_space<vmem>>, %arg7: memref<1x8x256xf32, #tpu.memory_space<vmem>>, %arg8: memref<8x512xf32, #tpu.memory_space<vmem>>) attributes {dimension_semantics = [#tpu.dimension_semantics<parallel>], iteration_bounds = array<i64: 2>, scalar_prefetch = 0 : i64, scratch_operands = 1 : i64, tpu.core_type = #tpu.core_type<tc>, window_params = [{transform_indices = @transform_0, window_bounds = array<i64: 1, 8, 256>}, {pipeline_mode = #tpu.pipeline_mode<synchronous>, transform_indices = @transform_1, window_bounds = array<i64: 8, 49>}, {pipeline_mode = #tpu.pipeline_mode<synchronous>, transform_indices = @transform_2, window_bounds = array<i64: 8, 1>}, {pipeline_mode = #tpu.pipeline_mode<synchronous>, transform_indices = @transform_3, window_bounds = array<i64: 8, 8>}, {pipeline_mode = #tpu.pipeline_mode<synchronous>, transform_indices = @transform_4, window_bounds = array<i64: 8, 1>}, {pipeline_mode = #tpu.pipeline_mode<synchronous>, transform_indices = @transform_5, window_bounds = array<i64: 8, 8>}, {transform_indices = @transform_6, window_bounds = array<i64: 1, 8, 256>}]} {
    %c0 = arith.constant 0 : index
    %c0_0 = arith.constant 0 : index
    %0 = vector.load %arg2[%c0, %c0_0] : memref<8x49xf32, #tpu.memory_space<vmem>>, vector<8x49xf32>
    %c0_1 = arith.constant 0 : index
    %c0_2 = arith.constant 0 : index
    %1 = vector.load %arg3[%c0_1, %c0_2] : memref<8x1xf32, #tpu.memory_space<vmem>>, vector<8x1xf32>
    %c0_3 = arith.constant 0 : index
    %c0_4 = arith.constant 0 : index
    %2 = vector.load %arg4[%c0_3, %c0_4] : memref<8x8xf32, #tpu.memory_space<vmem>>, vector<8x8xf32>
    %c0_5 = arith.constant 0 : index
    %c0_6 = arith.constant 0 : index
    %3 = vector.load %arg5[%c0_5, %c0_6] : memref<8x1xf32, #tpu.memory_space<vmem>>, vector<8x1xf32>
    %c0_7 = arith.constant 0 : index
    %c0_8 = arith.constant 0 : index
    %4 = vector.load %arg6[%c0_7, %c0_8] : memref<8x8xf32, #tpu.memory_space<vmem>>, vector<8x8xf32>
    %cst = arith.constant 0.000000e+00 : f32
    %5 = vector.broadcast %cst : f32 to vector<8x128xf32>
    %c0_9 = arith.constant 0 : index
    %c0_10 = arith.constant 0 : index
    %6 = vector.load %arg8[%c0_9, %c0_10] : memref<8x512xf32, #tpu.memory_space<vmem>>, vector<8x128xf32>
    tpu.vector_store %arg8[%c0_9, %c0_10], %5 {strides = array<i32>} : memref<8x512xf32, #tpu.memory_space<vmem>>, vector<8x128xf32>,
    %cst_11 = arith.constant 0.000000e+00 : f32
    %7 = vector.broadcast %cst_11 : f32 to vector<8x128xf32>
    %c0_12 = arith.constant 0 : index
    %c384 = arith.constant 384 : index
    %8 = vector.load %arg8[%c0_12, %c384] : memref<8x512xf32, #tpu.memory_space<vmem>>, vector<8x128xf32>
    tpu.vector_store %arg8[%c0_12, %c384], %7 {strides = array<i32>} : memref<8x512xf32, #tpu.memory_space<vmem>>, vector<8x128xf32>,
    %9 = tpu.iota {dimensions = array<i32: 1>} : vector<8x256xi32>
    %c15_i32 = arith.constant 15 : i32
    %10 = vector.broadcast %c15_i32 : i32 to vector<8x256xi32>
    %11 = arith.andi %9, %10 : vector<8x256xi32>
    %c3_i32 = arith.constant 3 : i32
    %12 = vector.broadcast %c3_i32 : i32 to vector<8x256xi32>
    %13 = arith.cmpi sge, %11, %12 : vector<8x256xi32>
    %c2_i32 = arith.constant 2 : i32
    %14 = vector.broadcast %c2_i32 : i32 to vector<8x256xi32>
    %15 = arith.cmpi sge, %11, %14 : vector<8x256xi32>
    %c1_i32 = arith.constant 1 : i32
    %16 = vector.broadcast %c1_i32 : i32 to vector<8x256xi32>
    %17 = arith.cmpi sge, %11, %16 : vector<8x256xi32>
    %c15_i32_13 = arith.constant 15 : i32
    %18 = vector.broadcast %c15_i32_13 : i32 to vector<8x256xi32>
    %19 = arith.cmpi slt, %11, %18 : vector<8x256xi32>
    %c14_i32 = arith.constant 14 : i32
    %20 = vector.broadcast %c14_i32 : i32 to vector<8x256xi32>
    %21 = arith.cmpi slt, %11, %20 : vector<8x256xi32>
    %c13_i32 = arith.constant 13 : i32
    %22 = vector.broadcast %c13_i32 : i32 to vector<8x256xi32>
    %23 = arith.cmpi slt, %11, %22 : vector<8x256xi32>
    %c0_14 = arith.constant 0 : index
    %c0_15 = arith.constant 0 : index
    %c0_16 = arith.constant 0 : index
    %24 = vector.load %arg1[%c0_14, %c0_15, %c0_16] : memref<1x8x256xf32, #tpu.memory_space<vmem>>, vector<1x8x256xf32>
    %25 = vector.shape_cast %24 : vector<1x8x256xf32> to vector<8x256xf32>
    %c0_17 = arith.constant 0 : index
    %c128 = arith.constant 128 : index
    %26 = vector.load %arg8[%c0_17, %c128] : memref<8x512xf32, #tpu.memory_space<vmem>>, vector<8x256xf32>
    tpu.vector_store %arg8[%c0_17, %c128], %25 {strides = array<i32>} : memref<8x512xf32, #tpu.memory_space<vmem>>, vector<8x256xf32>,
    %c0_18 = arith.constant 0 : index
    %c77 = arith.constant 77 : index
    %27 = vector.load %arg8[%c0_18, %c77] : memref<8x512xf32, #tpu.memory_space<vmem>>, vector<8x256xf32>
    %28 = vector.extract_strided_slice %0 {offsets = [0, 0], sizes = [8, 1], strides = [1, 1]} : vector<8x49xf32> to vector<8x1xf32>
    %29 = vector.broadcast %28 : vector<8x1xf32> to vector<8x256xf32>
    %30 = arith.mulf %29, %27 : vector<8x256xf32>
    %c0_19 = arith.constant 0 : index
    %c93 = arith.constant 93 : index
    %31 = vector.load %arg8[%c0_19, %c93] : memref<8x512xf32, #tpu.memory_space<vmem>>, vector<8x256xf32>
    %32 = vector.extract_strided_slice %0 {offsets = [0, 7], sizes = [8, 1], strides = [1, 1]} : vector<8x49xf32> to vector<8x1xf32>
    %33 = vector.broadcast %32 : vector<8x1xf32> to vector<8x256xf32>
    %34 = arith.mulf %33, %31 : vector<8x256xf32>
    %35 = arith.addf %30, %34 : vector<8x256xf32>
    %c0_20 = arith.constant 0 : index
    %c109 = arith.constant 109 : index
    %36 = vector.load %arg8[%c0_20, %c109] : memref<8x512xf32, #tpu.memory_space<vmem>>, vector<8x256xf32>
    %37 = vector.extract_strided_slice %0 {offsets = [0, 14], sizes = [8, 1], strides = [1, 1]} : vector<8x49xf32> to vector<8x1xf32>
    %38 = vector.broadcast %37 : vector<8x1xf32> to vector<8x256xf32>
    %39 = arith.mulf %38, %36 : vector<8x256xf32>
    %40 = arith.addf %35, %39 : vector<8x256xf32>
    %c0_21 = arith.constant 0 : index
    %c125 = arith.constant 125 : index
    %41 = vector.load %arg8[%c0_21, %c125] : memref<8x512xf32, #tpu.memory_space<vmem>>, vector<8x256xf32>
    %42 = vector.extract_strided_slice %0 {offsets = [0, 21], sizes = [8, 1], strides = [1, 1]} : vector<8x49xf32> to vector<8x1xf32>
    %43 = vector.broadcast %42 : vector<8x1xf32> to vector<8x256xf32>
    %44 = arith.mulf %43, %41 : vector<8x256xf32>
    %45 = arith.addf %40, %44 : vector<8x256xf32>
    %c0_22 = arith.constant 0 : index
    %c141 = arith.constant 141 : index
    %46 = vector.load %arg8[%c0_22, %c141] : memref<8x512xf32, #tpu.memory_space<vmem>>, vector<8x256xf32>
    %47 = vector.extract_strided_slice %0 {offsets = [0, 28], sizes = [8, 1], strides = [1, 1]} : vector<8x49xf32> to vector<8x1xf32>
    %48 = vector.broadcast %47 : vector<8x1xf32> to vector<8x256xf32>
    %49 = arith.mulf %48, %46 : vector<8x256xf32>
    %50 = arith.addf %45, %49 : vector<8x256xf32>
    %c0_23 = arith.constant 0 : index
    %c157 = arith.constant 157 : index
    %51 = vector.load %arg8[%c0_23, %c157] : memref<8x512xf32, #tpu.memory_space<vmem>>, vector<8x256xf32>
    %52 = vector.extract_strided_slice %0 {offsets = [0, 35], sizes = [8, 1], strides = [1, 1]} : vector<8x49xf32> to vector<8x1xf32>
    %53 = vector.broadcast %52 : vector<8x1xf32> to vector<8x256xf32>
    %54 = arith.mulf %53, %51 : vector<8x256xf32>
    %55 = arith.addf %50, %54 : vector<8x256xf32>
    %c0_24 = arith.constant 0 : index
    %c173 = arith.constant 173 : index
    %56 = vector.load %arg8[%c0_24, %c173] : memref<8x512xf32, #tpu.memory_space<vmem>>, vector<8x256xf32>
    %57 = vector.extract_strided_slice %0 {offsets = [0, 42], sizes = [8, 1], strides = [1, 1]} : vector<8x49xf32> to vector<8x1xf32>
    %58 = vector.broadcast %57 : vector<8x1xf32> to vector<8x256xf32>
    %59 = arith.mulf %58, %56 : vector<8x256xf32>
    %60 = arith.addf %55, %59 : vector<8x256xf32>
    %cst_25 = arith.constant 0.000000e+00 : f32
    %61 = vector.broadcast %cst_25 : f32 to vector<8x256xf32>
    %62 = arith.select %13, %60, %61 : vector<8x256xi1>, vector<8x256xf32>
    %c0_26 = arith.constant 0 : index
    %c78 = arith.constant 78 : index
    %63 = vector.load %arg8[%c0_26, %c78] : memref<8x512xf32, #tpu.memory_space<vmem>>, vector<8x256xf32>
    %64 = vector.extract_strided_slice %0 {offsets = [0, 1], sizes = [8, 1], strides = [1, 1]} : vector<8x49xf32> to vector<8x1xf32>
    %65 = vector.broadcast %64 : vector<8x1xf32> to vector<8x256xf32>
    %66 = arith.mulf %65, %63 : vector<8x256xf32>
    %c0_27 = arith.constant 0 : index
    %c94 = arith.constant 94 : index
    %67 = vector.load %arg8[%c0_27, %c94] : memref<8x512xf32, #tpu.memory_space<vmem>>, vector<8x256xf32>
    %68 = vector.extract_strided_slice %0 {offsets = [0, 8], sizes = [8, 1], strides = [1, 1]} : vector<8x49xf32> to vector<8x1xf32>
    %69 = vector.broadcast %68 : vector<8x1xf32> to vector<8x256xf32>
    %70 = arith.mulf %69, %67 : vector<8x256xf32>
    %71 = arith.addf %66, %70 : vector<8x256xf32>
    %c0_28 = arith.constant 0 : index
    %c110 = arith.constant 110 : index
    %72 = vector.load %arg8[%c0_28, %c110] : memref<8x512xf32, #tpu.memory_space<vmem>>, vector<8x256xf32>
    %73 = vector.extract_strided_slice %0 {offsets = [0, 15], sizes = [8, 1], strides = [1, 1]} : vector<8x49xf32> to vector<8x1xf32>
    %74 = vector.broadcast %73 : vector<8x1xf32> to vector<8x256xf32>
    %75 = arith.mulf %74, %72 : vector<8x256xf32>
    %76 = arith.addf %71, %75 : vector<8x256xf32>
    %c0_29 = arith.constant 0 : index
    %c126 = arith.constant 126 : index
    %77 = vector.load %arg8[%c0_29, %c126] : memref<8x512xf32, #tpu.memory_space<vmem>>, vector<8x256xf32>
    %78 = vector.extract_strided_slice %0 {offsets = [0, 22], sizes = [8, 1], strides = [1, 1]} : vector<8x49xf32> to vector<8x1xf32>
    %79 = vector.broadcast %78 : vector<8x1xf32> to vector<8x256xf32>
    %80 = arith.mulf %79, %77 : vector<8x256xf32>
    %81 = arith.addf %76, %80 : vector<8x256xf32>
    %c0_30 = arith.constant 0 : index
    %c142 = arith.constant 142 : index
    %82 = vector.load %arg8[%c0_30, %c142] : memref<8x512xf32, #tpu.memory_space<vmem>>, vector<8x256xf32>
    %83 = vector.extract_strided_slice %0 {offsets = [0, 29], sizes = [8, 1], strides = [1, 1]} : vector<8x49xf32> to vector<8x1xf32>
    %84 = vector.broadcast %83 : vector<8x1xf32> to vector<8x256xf32>
    %85 = arith.mulf %84, %82 : vector<8x256xf32>
    %86 = arith.addf %81, %85 : vector<8x256xf32>
    %c0_31 = arith.constant 0 : index
    %c158 = arith.constant 158 : index
    %87 = vector.load %arg8[%c0_31, %c158] : memref<8x512xf32, #tpu.memory_space<vmem>>, vector<8x256xf32>
    %88 = vector.extract_strided_slice %0 {offsets = [0, 36], sizes = [8, 1], strides = [1, 1]} : vector<8x49xf32> to vector<8x1xf32>
    %89 = vector.broadcast %88 : vector<8x1xf32> to vector<8x256xf32>
    %90 = arith.mulf %89, %87 : vector<8x256xf32>
    %91 = arith.addf %86, %90 : vector<8x256xf32>
    %c0_32 = arith.constant 0 : index
    %c174 = arith.constant 174 : index
    %92 = vector.load %arg8[%c0_32, %c174] : memref<8x512xf32, #tpu.memory_space<vmem>>, vector<8x256xf32>
    %93 = vector.extract_strided_slice %0 {offsets = [0, 43], sizes = [8, 1], strides = [1, 1]} : vector<8x49xf32> to vector<8x1xf32>
    %94 = vector.broadcast %93 : vector<8x1xf32> to vector<8x256xf32>
    %95 = arith.mulf %94, %92 : vector<8x256xf32>
    %96 = arith.addf %91, %95 : vector<8x256xf32>
    %cst_33 = arith.constant 0.000000e+00 : f32
    %97 = vector.broadcast %cst_33 : f32 to vector<8x256xf32>
    %98 = arith.select %15, %96, %97 : vector<8x256xi1>, vector<8x256xf32>
    %99 = arith.addf %62, %98 : vector<8x256xf32>
    %c0_34 = arith.constant 0 : index
    %c79 = arith.constant 79 : index
    %100 = vector.load %arg8[%c0_34, %c79] : memref<8x512xf32, #tpu.memory_space<vmem>>, vector<8x256xf32>
    %101 = vector.extract_strided_slice %0 {offsets = [0, 2], sizes = [8, 1], strides = [1, 1]} : vector<8x49xf32> to vector<8x1xf32>
    %102 = vector.broadcast %101 : vector<8x1xf32> to vector<8x256xf32>
    %103 = arith.mulf %102, %100 : vector<8x256xf32>
    %c0_35 = arith.constant 0 : index
    %c95 = arith.constant 95 : index
    %104 = vector.load %arg8[%c0_35, %c95] : memref<8x512xf32, #tpu.memory_space<vmem>>, vector<8x256xf32>
    %105 = vector.extract_strided_slice %0 {offsets = [0, 9], sizes = [8, 1], strides = [1, 1]} : vector<8x49xf32> to vector<8x1xf32>
    %106 = vector.broadcast %105 : vector<8x1xf32> to vector<8x256xf32>
    %107 = arith.mulf %106, %104 : vector<8x256xf32>
    %108 = arith.addf %103, %107 : vector<8x256xf32>
    %c0_36 = arith.constant 0 : index
    %c111 = arith.constant 111 : index
    %109 = vector.load %arg8[%c0_36, %c111] : memref<8x512xf32, #tpu.memory_space<vmem>>, vector<8x256xf32>
    %110 = vector.extract_strided_slice %0 {offsets = [0, 16], sizes = [8, 1], strides = [1, 1]} : vector<8x49xf32> to vector<8x1xf32>
    %111 = vector.broadcast %110 : vector<8x1xf32> to vector<8x256xf32>
    %112 = arith.mulf %111, %109 : vector<8x256xf32>
    %113 = arith.addf %108, %112 : vector<8x256xf32>
    %c0_37 = arith.constant 0 : index
    %c127 = arith.constant 127 : index
    %114 = vector.load %arg8[%c0_37, %c127] : memref<8x512xf32, #tpu.memory_space<vmem>>, vector<8x256xf32>
    %115 = vector.extract_strided_slice %0 {offsets = [0, 23], sizes = [8, 1], strides = [1, 1]} : vector<8x49xf32> to vector<8x1xf32>
    %116 = vector.broadcast %115 : vector<8x1xf32> to vector<8x256xf32>
    %117 = arith.mulf %116, %114 : vector<8x256xf32>
    %118 = arith.addf %113, %117 : vector<8x256xf32>
    %c0_38 = arith.constant 0 : index
    %c143 = arith.constant 143 : index
    %119 = vector.load %arg8[%c0_38, %c143] : memref<8x512xf32, #tpu.memory_space<vmem>>, vector<8x256xf32>
    %120 = vector.extract_strided_slice %0 {offsets = [0, 30], sizes = [8, 1], strides = [1, 1]} : vector<8x49xf32> to vector<8x1xf32>
    %121 = vector.broadcast %120 : vector<8x1xf32> to vector<8x256xf32>
    %122 = arith.mulf %121, %119 : vector<8x256xf32>
    %123 = arith.addf %118, %122 : vector<8x256xf32>
    %c0_39 = arith.constant 0 : index
    %c159 = arith.constant 159 : index
    %124 = vector.load %arg8[%c0_39, %c159] : memref<8x512xf32, #tpu.memory_space<vmem>>, vector<8x256xf32>
    %125 = vector.extract_strided_slice %0 {offsets = [0, 37], sizes = [8, 1], strides = [1, 1]} : vector<8x49xf32> to vector<8x1xf32>
    %126 = vector.broadcast %125 : vector<8x1xf32> to vector<8x256xf32>
    %127 = arith.mulf %126, %124 : vector<8x256xf32>
    %128 = arith.addf %123, %127 : vector<8x256xf32>
    %c0_40 = arith.constant 0 : index
    %c175 = arith.constant 175 : index
    %129 = vector.load %arg8[%c0_40, %c175] : memref<8x512xf32, #tpu.memory_space<vmem>>, vector<8x256xf32>
    %130 = vector.extract_strided_slice %0 {offsets = [0, 44], sizes = [8, 1], strides = [1, 1]} : vector<8x49xf32> to vector<8x1xf32>
    %131 = vector.broadcast %130 : vector<8x1xf32> to vector<8x256xf32>
    %132 = arith.mulf %131, %129 : vector<8x256xf32>
    %133 = arith.addf %128, %132 : vector<8x256xf32>
    %cst_41 = arith.constant 0.000000e+00 : f32
    %134 = vector.broadcast %cst_41 : f32 to vector<8x256xf32>
    %135 = arith.select %17, %133, %134 : vector<8x256xi1>, vector<8x256xf32>
    %136 = arith.addf %99, %135 : vector<8x256xf32>
    %c0_42 = arith.constant 0 : index
    %c80 = arith.constant 80 : index
    %137 = vector.load %arg8[%c0_42, %c80] : memref<8x512xf32, #tpu.memory_space<vmem>>, vector<8x256xf32>
    %138 = vector.extract_strided_slice %0 {offsets = [0, 3], sizes = [8, 1], strides = [1, 1]} : vector<8x49xf32> to vector<8x1xf32>
    %139 = vector.broadcast %138 : vector<8x1xf32> to vector<8x256xf32>
    %140 = arith.mulf %139, %137 : vector<8x256xf32>
    %c0_43 = arith.constant 0 : index
    %c96 = arith.constant 96 : index
    %141 = vector.load %arg8[%c0_43, %c96] : memref<8x512xf32, #tpu.memory_space<vmem>>, vector<8x256xf32>
    %142 = vector.extract_strided_slice %0 {offsets = [0, 10], sizes = [8, 1], strides = [1, 1]} : vector<8x49xf32> to vector<8x1xf32>
    %143 = vector.broadcast %142 : vector<8x1xf32> to vector<8x256xf32>
    %144 = arith.mulf %143, %141 : vector<8x256xf32>
    %145 = arith.addf %140, %144 : vector<8x256xf32>
    %c0_44 = arith.constant 0 : index
    %c112 = arith.constant 112 : index
    %146 = vector.load %arg8[%c0_44, %c112] : memref<8x512xf32, #tpu.memory_space<vmem>>, vector<8x256xf32>
    %147 = vector.extract_strided_slice %0 {offsets = [0, 17], sizes = [8, 1], strides = [1, 1]} : vector<8x49xf32> to vector<8x1xf32>
    %148 = vector.broadcast %147 : vector<8x1xf32> to vector<8x256xf32>
    %149 = arith.mulf %148, %146 : vector<8x256xf32>
    %150 = arith.addf %145, %149 : vector<8x256xf32>
    %c0_45 = arith.constant 0 : index
    %c128_46 = arith.constant 128 : index
    %151 = vector.load %arg8[%c0_45, %c128_46] : memref<8x512xf32, #tpu.memory_space<vmem>>, vector<8x256xf32>
    %152 = vector.extract_strided_slice %0 {offsets = [0, 24], sizes = [8, 1], strides = [1, 1]} : vector<8x49xf32> to vector<8x1xf32>
    %153 = vector.broadcast %152 : vector<8x1xf32> to vector<8x256xf32>
    %154 = arith.mulf %153, %151 : vector<8x256xf32>
    %155 = arith.addf %150, %154 : vector<8x256xf32>
    %c0_47 = arith.constant 0 : index
    %c144 = arith.constant 144 : index
    %156 = vector.load %arg8[%c0_47, %c144] : memref<8x512xf32, #tpu.memory_space<vmem>>, vector<8x256xf32>
    %157 = vector.extract_strided_slice %0 {offsets = [0, 31], sizes = [8, 1], strides = [1, 1]} : vector<8x49xf32> to vector<8x1xf32>
    %158 = vector.broadcast %157 : vector<8x1xf32> to vector<8x256xf32>
    %159 = arith.mulf %158, %156 : vector<8x256xf32>
    %160 = arith.addf %155, %159 : vector<8x256xf32>
    %c0_48 = arith.constant 0 : index
    %c160 = arith.constant 160 : index
    %161 = vector.load %arg8[%c0_48, %c160] : memref<8x512xf32, #tpu.memory_space<vmem>>, vector<8x256xf32>
    %162 = vector.extract_strided_slice %0 {offsets = [0, 38], sizes = [8, 1], strides = [1, 1]} : vector<8x49xf32> to vector<8x1xf32>
    %163 = vector.broadcast %162 : vector<8x1xf32> to vector<8x256xf32>
    %164 = arith.mulf %163, %161 : vector<8x256xf32>
    %165 = arith.addf %160, %164 : vector<8x256xf32>
    %c0_49 = arith.constant 0 : index
    %c176 = arith.constant 176 : index
    %166 = vector.load %arg8[%c0_49, %c176] : memref<8x512xf32, #tpu.memory_space<vmem>>, vector<8x256xf32>
    %167 = vector.extract_strided_slice %0 {offsets = [0, 45], sizes = [8, 1], strides = [1, 1]} : vector<8x49xf32> to vector<8x1xf32>
    %168 = vector.broadcast %167 : vector<8x1xf32> to vector<8x256xf32>
    %169 = arith.mulf %168, %166 : vector<8x256xf32>
    %170 = arith.addf %165, %169 : vector<8x256xf32>
    %171 = arith.addf %136, %170 : vector<8x256xf32>
    %c0_50 = arith.constant 0 : index
    %c81 = arith.constant 81 : index
    %172 = vector.load %arg8[%c0_50, %c81] : memref<8x512xf32, #tpu.memory_space<vmem>>, vector<8x256xf32>
    %173 = vector.extract_strided_slice %0 {offsets = [0, 4], sizes = [8, 1], strides = [1, 1]} : vector<8x49xf32> to vector<8x1xf32>
    %174 = vector.broadcast %173 : vector<8x1xf32> to vector<8x256xf32>
    %175 = arith.mulf %174, %172 : vector<8x256xf32>
    %c0_51 = arith.constant 0 : index
    %c97 = arith.constant 97 : index
    %176 = vector.load %arg8[%c0_51, %c97] : memref<8x512xf32, #tpu.memory_space<vmem>>, vector<8x256xf32>
    %177 = vector.extract_strided_slice %0 {offsets = [0, 11], sizes = [8, 1], strides = [1, 1]} : vector<8x49xf32> to vector<8x1xf32>
    %178 = vector.broadcast %177 : vector<8x1xf32> to vector<8x256xf32>
    %179 = arith.mulf %178, %176 : vector<8x256xf32>
    %180 = arith.addf %175, %179 : vector<8x256xf32>
    %c0_52 = arith.constant 0 : index
    %c113 = arith.constant 113 : index
    %181 = vector.load %arg8[%c0_52, %c113] : memref<8x512xf32, #tpu.memory_space<vmem>>, vector<8x256xf32>
    %182 = vector.extract_strided_slice %0 {offsets = [0, 18], sizes = [8, 1], strides = [1, 1]} : vector<8x49xf32> to vector<8x1xf32>
    %183 = vector.broadcast %182 : vector<8x1xf32> to vector<8x256xf32>
    %184 = arith.mulf %183, %181 : vector<8x256xf32>
    %185 = arith.addf %180, %184 : vector<8x256xf32>
    %c0_53 = arith.constant 0 : index
    %c129 = arith.constant 129 : index
    %186 = vector.load %arg8[%c0_53, %c129] : memref<8x512xf32, #tpu.memory_space<vmem>>, vector<8x256xf32>
    %187 = vector.extract_strided_slice %0 {offsets = [0, 25], sizes = [8, 1], strides = [1, 1]} : vector<8x49xf32> to vector<8x1xf32>
    %188 = vector.broadcast %187 : vector<8x1xf32> to vector<8x256xf32>
    %189 = arith.mulf %188, %186 : vector<8x256xf32>
    %190 = arith.addf %185, %189 : vector<8x256xf32>
    %c0_54 = arith.constant 0 : index
    %c145 = arith.constant 145 : index
    %191 = vector.load %arg8[%c0_54, %c145] : memref<8x512xf32, #tpu.memory_space<vmem>>, vector<8x256xf32>
    %192 = vector.extract_strided_slice %0 {offsets = [0, 32], sizes = [8, 1], strides = [1, 1]} : vector<8x49xf32> to vector<8x1xf32>
    %193 = vector.broadcast %192 : vector<8x1xf32> to vector<8x256xf32>
    %194 = arith.mulf %193, %191 : vector<8x256xf32>
    %195 = arith.addf %190, %194 : vector<8x256xf32>
    %c0_55 = arith.constant 0 : index
    %c161 = arith.constant 161 : index
    %196 = vector.load %arg8[%c0_55, %c161] : memref<8x512xf32, #tpu.memory_space<vmem>>, vector<8x256xf32>
    %197 = vector.extract_strided_slice %0 {offsets = [0, 39], sizes = [8, 1], strides = [1, 1]} : vector<8x49xf32> to vector<8x1xf32>
    %198 = vector.broadcast %197 : vector<8x1xf32> to vector<8x256xf32>
    %199 = arith.mulf %198, %196 : vector<8x256xf32>
    %200 = arith.addf %195, %199 : vector<8x256xf32>
    %c0_56 = arith.constant 0 : index
    %c177 = arith.constant 177 : index
    %201 = vector.load %arg8[%c0_56, %c177] : memref<8x512xf32, #tpu.memory_space<vmem>>, vector<8x256xf32>
    %202 = vector.extract_strided_slice %0 {offsets = [0, 46], sizes = [8, 1], strides = [1, 1]} : vector<8x49xf32> to vector<8x1xf32>
    %203 = vector.broadcast %202 : vector<8x1xf32> to vector<8x256xf32>
    %204 = arith.mulf %203, %201 : vector<8x256xf32>
    %205 = arith.addf %200, %204 : vector<8x256xf32>
    %cst_57 = arith.constant 0.000000e+00 : f32
    %206 = vector.broadcast %cst_57 : f32 to vector<8x256xf32>
    %207 = arith.select %19, %205, %206 : vector<8x256xi1>, vector<8x256xf32>
    %208 = arith.addf %171, %207 : vector<8x256xf32>
    %c0_58 = arith.constant 0 : index
    %c82 = arith.constant 82 : index
    %209 = vector.load %arg8[%c0_58, %c82] : memref<8x512xf32, #tpu.memory_space<vmem>>, vector<8x256xf32>
    %210 = vector.extract_strided_slice %0 {offsets = [0, 5], sizes = [8, 1], strides = [1, 1]} : vector<8x49xf32> to vector<8x1xf32>
    %211 = vector.broadcast %210 : vector<8x1xf32> to vector<8x256xf32>
    %212 = arith.mulf %211, %209 : vector<8x256xf32>
    %c0_59 = arith.constant 0 : index
    %c98 = arith.constant 98 : index
    %213 = vector.load %arg8[%c0_59, %c98] : memref<8x512xf32, #tpu.memory_space<vmem>>, vector<8x256xf32>
    %214 = vector.extract_strided_slice %0 {offsets = [0, 12], sizes = [8, 1], strides = [1, 1]} : vector<8x49xf32> to vector<8x1xf32>
    %215 = vector.broadcast %214 : vector<8x1xf32> to vector<8x256xf32>
    %216 = arith.mulf %215, %213 : vector<8x256xf32>
    %217 = arith.addf %212, %216 : vector<8x256xf32>
    %c0_60 = arith.constant 0 : index
    %c114 = arith.constant 114 : index
    %218 = vector.load %arg8[%c0_60, %c114] : memref<8x512xf32, #tpu.memory_space<vmem>>, vector<8x256xf32>
    %219 = vector.extract_strided_slice %0 {offsets = [0, 19], sizes = [8, 1], strides = [1, 1]} : vector<8x49xf32> to vector<8x1xf32>
    %220 = vector.broadcast %219 : vector<8x1xf32> to vector<8x256xf32>
    %221 = arith.mulf %220, %218 : vector<8x256xf32>
    %222 = arith.addf %217, %221 : vector<8x256xf32>
    %c0_61 = arith.constant 0 : index
    %c130 = arith.constant 130 : index
    %223 = vector.load %arg8[%c0_61, %c130] : memref<8x512xf32, #tpu.memory_space<vmem>>, vector<8x256xf32>
    %224 = vector.extract_strided_slice %0 {offsets = [0, 26], sizes = [8, 1], strides = [1, 1]} : vector<8x49xf32> to vector<8x1xf32>
    %225 = vector.broadcast %224 : vector<8x1xf32> to vector<8x256xf32>
    %226 = arith.mulf %225, %223 : vector<8x256xf32>
    %227 = arith.addf %222, %226 : vector<8x256xf32>
    %c0_62 = arith.constant 0 : index
    %c146 = arith.constant 146 : index
    %228 = vector.load %arg8[%c0_62, %c146] : memref<8x512xf32, #tpu.memory_space<vmem>>, vector<8x256xf32>
    %229 = vector.extract_strided_slice %0 {offsets = [0, 33], sizes = [8, 1], strides = [1, 1]} : vector<8x49xf32> to vector<8x1xf32>
    %230 = vector.broadcast %229 : vector<8x1xf32> to vector<8x256xf32>
    %231 = arith.mulf %230, %228 : vector<8x256xf32>
    %232 = arith.addf %227, %231 : vector<8x256xf32>
    %c0_63 = arith.constant 0 : index
    %c162 = arith.constant 162 : index
    %233 = vector.load %arg8[%c0_63, %c162] : memref<8x512xf32, #tpu.memory_space<vmem>>, vector<8x256xf32>
    %234 = vector.extract_strided_slice %0 {offsets = [0, 40], sizes = [8, 1], strides = [1, 1]} : vector<8x49xf32> to vector<8x1xf32>
    %235 = vector.broadcast %234 : vector<8x1xf32> to vector<8x256xf32>
    %236 = arith.mulf %235, %233 : vector<8x256xf32>
    %237 = arith.addf %232, %236 : vector<8x256xf32>
    %c0_64 = arith.constant 0 : index
    %c178 = arith.constant 178 : index
    %238 = vector.load %arg8[%c0_64, %c178] : memref<8x512xf32, #tpu.memory_space<vmem>>, vector<8x256xf32>
    %239 = vector.extract_strided_slice %0 {offsets = [0, 47], sizes = [8, 1], strides = [1, 1]} : vector<8x49xf32> to vector<8x1xf32>
    %240 = vector.broadcast %239 : vector<8x1xf32> to vector<8x256xf32>
    %241 = arith.mulf %240, %238 : vector<8x256xf32>
    %242 = arith.addf %237, %241 : vector<8x256xf32>
    %cst_65 = arith.constant 0.000000e+00 : f32
    %243 = vector.broadcast %cst_65 : f32 to vector<8x256xf32>
    %244 = arith.select %21, %242, %243 : vector<8x256xi1>, vector<8x256xf32>
    %245 = arith.addf %208, %244 : vector<8x256xf32>
    %c0_66 = arith.constant 0 : index
    %c83 = arith.constant 83 : index
    %246 = vector.load %arg8[%c0_66, %c83] : memref<8x512xf32, #tpu.memory_space<vmem>>, vector<8x256xf32>
    %247 = vector.extract_strided_slice %0 {offsets = [0, 6], sizes = [8, 1], strides = [1, 1]} : vector<8x49xf32> to vector<8x1xf32>
    %248 = vector.broadcast %247 : vector<8x1xf32> to vector<8x256xf32>
    %249 = arith.mulf %248, %246 : vector<8x256xf32>
    %c0_67 = arith.constant 0 : index
    %c99 = arith.constant 99 : index
    %250 = vector.load %arg8[%c0_67, %c99] : memref<8x512xf32, #tpu.memory_space<vmem>>, vector<8x256xf32>
    %251 = vector.extract_strided_slice %0 {offsets = [0, 13], sizes = [8, 1], strides = [1, 1]} : vector<8x49xf32> to vector<8x1xf32>
    %252 = vector.broadcast %251 : vector<8x1xf32> to vector<8x256xf32>
    %253 = arith.mulf %252, %250 : vector<8x256xf32>
    %254 = arith.addf %249, %253 : vector<8x256xf32>
    %c0_68 = arith.constant 0 : index
    %c115 = arith.constant 115 : index
    %255 = vector.load %arg8[%c0_68, %c115] : memref<8x512xf32, #tpu.memory_space<vmem>>, vector<8x256xf32>
    %256 = vector.extract_strided_slice %0 {offsets = [0, 20], sizes = [8, 1], strides = [1, 1]} : vector<8x49xf32> to vector<8x1xf32>
    %257 = vector.broadcast %256 : vector<8x1xf32> to vector<8x256xf32>
    %258 = arith.mulf %257, %255 : vector<8x256xf32>
    %259 = arith.addf %254, %258 : vector<8x256xf32>
    %c0_69 = arith.constant 0 : index
    %c131 = arith.constant 131 : index
    %260 = vector.load %arg8[%c0_69, %c131] : memref<8x512xf32, #tpu.memory_space<vmem>>, vector<8x256xf32>
    %261 = vector.extract_strided_slice %0 {offsets = [0, 27], sizes = [8, 1], strides = [1, 1]} : vector<8x49xf32> to vector<8x1xf32>
    %262 = vector.broadcast %261 : vector<8x1xf32> to vector<8x256xf32>
    %263 = arith.mulf %262, %260 : vector<8x256xf32>
    %264 = arith.addf %259, %263 : vector<8x256xf32>
    %c0_70 = arith.constant 0 : index
    %c147 = arith.constant 147 : index
    %265 = vector.load %arg8[%c0_70, %c147] : memref<8x512xf32, #tpu.memory_space<vmem>>, vector<8x256xf32>
    %266 = vector.extract_strided_slice %0 {offsets = [0, 34], sizes = [8, 1], strides = [1, 1]} : vector<8x49xf32> to vector<8x1xf32>
    %267 = vector.broadcast %266 : vector<8x1xf32> to vector<8x256xf32>
    %268 = arith.mulf %267, %265 : vector<8x256xf32>
    %269 = arith.addf %264, %268 : vector<8x256xf32>
    %c0_71 = arith.constant 0 : index
    %c163 = arith.constant 163 : index
    %270 = vector.load %arg8[%c0_71, %c163] : memref<8x512xf32, #tpu.memory_space<vmem>>, vector<8x256xf32>
    %271 = vector.extract_strided_slice %0 {offsets = [0, 41], sizes = [8, 1], strides = [1, 1]} : vector<8x49xf32> to vector<8x1xf32>
    %272 = vector.broadcast %271 : vector<8x1xf32> to vector<8x256xf32>
    %273 = arith.mulf %272, %270 : vector<8x256xf32>
    %274 = arith.addf %269, %273 : vector<8x256xf32>
    %c0_72 = arith.constant 0 : index
    %c179 = arith.constant 179 : index
    %275 = vector.load %arg8[%c0_72, %c179] : memref<8x512xf32, #tpu.memory_space<vmem>>, vector<8x256xf32>
    %276 = vector.extract_strided_slice %0 {offsets = [0, 48], sizes = [8, 1], strides = [1, 1]} : vector<8x49xf32> to vector<8x1xf32>
    %277 = vector.broadcast %276 : vector<8x1xf32> to vector<8x256xf32>
    %278 = arith.mulf %277, %275 : vector<8x256xf32>
    %279 = arith.addf %274, %278 : vector<8x256xf32>
    %cst_73 = arith.constant 0.000000e+00 : f32
    %280 = vector.broadcast %cst_73 : f32 to vector<8x256xf32>
    %281 = arith.select %23, %279, %280 : vector<8x256xi1>, vector<8x256xf32>
    %282 = arith.addf %245, %281 : vector<8x256xf32>
    %283 = vector.broadcast %1 : vector<8x1xf32> to vector<8x256xf32>
    %284 = arith.addf %282, %283 : vector<8x256xf32>
    %285 = vector.shape_cast %284 : vector<8x256xf32> to vector<1x8x256xf32>
    %cst_74 = arith.constant dense<0.000000e+00> : vector<1xf32>
    %286 = vector.multi_reduction <add>, %285, %cst_74 [1, 2] : vector<1x8x256xf32> to vector<1xf32>
    %287 = vector.shape_cast %286 : vector<1xf32> to vector<1x1x1xf32>
    %288 = vector.extract %287[0, 0, 0] : f32 from vector<1x1x1xf32>
    %289 = vector.broadcast %288 : f32 to vector<1x1xf32>
    %cst_75 = arith.constant 2.048000e+03 : f32
    %290 = vector.broadcast %cst_75 : f32 to vector<1x1xf32>
    %291 = arith.divf %289, %290 : vector<1x1xf32>
    %292 = vector.broadcast %291 : vector<1x1xf32> to vector<8x256xf32>
    %293 = arith.subf %284, %292 : vector<8x256xf32>
    %294 = arith.mulf %293, %293 : vector<8x256xf32>
    %295 = vector.shape_cast %294 : vector<8x256xf32> to vector<1x8x256xf32>
    %cst_76 = arith.constant dense<0.000000e+00> : vector<1xf32>
    %296 = vector.multi_reduction <add>, %295, %cst_76 [1, 2] : vector<1x8x256xf32> to vector<1xf32>
    %297 = vector.shape_cast %296 : vector<1xf32> to vector<1x1x1xf32>
    %298 = vector.extract %297[0, 0, 0] : f32 from vector<1x1x1xf32>
    %299 = vector.broadcast %298 : f32 to vector<1x1xf32>
    %cst_77 = arith.constant 2.048000e+03 : f32
    %300 = vector.broadcast %cst_77 : f32 to vector<1x1xf32>
    %301 = arith.divf %299, %300 : vector<1x1xf32>
    %cst_78 = arith.constant 9.99999974E-6 : f32
    %302 = vector.broadcast %cst_78 : f32 to vector<1x1xf32>
    %303 = arith.addf %301, %302 : vector<1x1xf32>
    %304 = math.rsqrt %303 : vector<1x1xf32>
    %305 = vector.broadcast %304 : vector<1x1xf32> to vector<8x256xf32>
    %306 = arith.mulf %293, %305 : vector<8x256xf32>
    %cst_79 = arith.constant dense<0.000000e+00> : vector<8x256xf32>
    %307 = tpu.matmul %2, %306, %cst_79 {dimension_numbers = #tpu.dot_dimension_numbers<[1], [0], [0], [1], [0, 0, 1, 1], [], []>} : vector<8x8xf32>, vector<8x256xf32>, vector<8x256xf32> -> vector<8x256xf32>
    %308 = vector.broadcast %3 : vector<8x1xf32> to vector<8x256xf32>
    %309 = arith.addf %307, %308 : vector<8x256xf32>
    %310 = math.erf %309 : vector<8x256xf32>
    %cst_80 = arith.constant 1.000000e+00 : f32
    %311 = vector.broadcast %cst_80 : f32 to vector<8x256xf32>
    %312 = arith.addf %311, %310 : vector<8x256xf32>
    %313 = arith.mulf %309, %312 : vector<8x256xf32>
    %cst_81 = arith.constant dense<0.000000e+00> : vector<8x256xf32>
    %314 = tpu.matmul %4, %313, %cst_81 {dimension_numbers = #tpu.dot_dimension_numbers<[1], [0], [0], [1], [0, 0, 1, 1], [], []>} : vector<8x8xf32>, vector<8x256xf32>, vector<8x256xf32> -> vector<8x256xf32>
    %c0_82 = arith.constant 0 : index
    %c0_83 = arith.constant 0 : index
    %c0_84 = arith.constant 0 : index
    %315 = vector.load %arg1[%c0_82, %c0_83, %c0_84] : memref<1x8x256xf32, #tpu.memory_space<vmem>>, vector<1x8x256xf32>
    %316 = vector.shape_cast %315 : vector<1x8x256xf32> to vector<8x256xf32>
    %317 = arith.addf %314, %316 : vector<8x256xf32>
    %c0_85 = arith.constant 0 : index
    %c0_86 = arith.constant 0 : index
    %c0_87 = arith.constant 0 : index
    %318 = vector.load %arg7[%c0_85, %c0_86, %c0_87] : memref<1x8x256xf32, #tpu.memory_space<vmem>>, vector<1x8x256xf32>
    %319 = vector.shape_cast %318 : vector<1x8x256xf32> to vector<8x256xf32>
    %320 = vector.shape_cast %317 : vector<8x256xf32> to vector<1x8x256xf32>
    tpu.vector_store %arg7[%c0_85, %c0_86, %c0_87], %320 {strides = array<i32>} : memref<1x8x256xf32, #tpu.memory_space<vmem>>, vector<1x8x256xf32>,
    return
  }
  func.func @transform_0(%arg0: i32) -> (i32, i32, i32) {
    %c0_i32 = arith.constant 0 : i32
    %c0_i32_0 = arith.constant 0 : i32
    %c0_i32_1 = arith.constant 0 : i32
    return %arg0, %c0_i32, %c0_i32_0 : i32, i32, i32
  }
  func.func @transform_1(%arg0: i32) -> (i32, i32) {
    %c0_i32 = arith.constant 0 : i32
    %c0_i32_0 = arith.constant 0 : i32
    %c0_i32_1 = arith.constant 0 : i32
    return %c0_i32, %c0_i32_0 : i32, i32
  }
  func.func @transform_2(%arg0: i32) -> (i32, i32) {
    %c0_i32 = arith.constant 0 : i32
    %c0_i32_0 = arith.constant 0 : i32
    %c0_i32_1 = arith.constant 0 : i32
    return %c0_i32, %c0_i32_0 : i32, i32
  }
  func.func @transform_3(%arg0: i32) -> (i32, i32) {
    %c0_i32 = arith.constant 0 : i32
    %c0_i32_0 = arith.constant 0 : i32
    %c0_i32_1 = arith.constant 0 : i32
    return %c0_i32, %c0_i32_0 : i32, i32
  }
  func.func @transform_4(%arg0: i32) -> (i32, i32) {
    %c0_i32 = arith.constant 0 : i32
    %c0_i32_0 = arith.constant 0 : i32
    %c0_i32_1 = arith.constant 0 : i32
    return %c0_i32, %c0_i32_0 : i32, i32
  }
  func.func @transform_5(%arg0: i32) -> (i32, i32) {
    %c0_i32 = arith.constant 0 : i32
    %c0_i32_0 = arith.constant 0 : i32
    %c0_i32_1 = arith.constant 0 : i32
    return %c0_i32, %c0_i32_0 : i32, i32
  }
  func.func @transform_6(%arg0: i32) -> (i32, i32, i32) {
    %c0_i32 = arith.constant 0 : i32
    %c0_i32_0 = arith.constant 0 : i32
    %c0_i32_1 = arith.constant 0 : i32
    return %arg0, %c0_i32, %c0_i32_0 : i32, i32, i32
  }
}

</mosaic_0001>

<bundles_post_ra>
// kernel: tpu_custom_call.1
= control target key start
LH: loop header
LB: loop body
LE: loop exit
PB: predicated region body
PF: predicated region fallthrough
CT: control target
= control target key end

     0   :  { %11 = vsyncpa [#allocation4], 0  ;;  %s3289_s0 = inlined_call_operand.hbm [shape: f32[2,8,256], index: 0, kind: input, shape index: {}]   ;;  %s3290_s1 = inlined_call_operand.vmem [shape: f32[8,49], index: 1, kind: input, shape index: {}]   ;;  %s3291_s2 = inlined_call_operand.vmem [shape: f32[8,1], index: 2, kind: input, shape index: {}]   ;;  %s3292_s3 = inlined_call_operand.vmem [shape: f32[8,8], index: 3, kind: input, shape index: {}]   ;;  %s3293_s4 = inlined_call_operand.vmem [shape: f32[8,1], index: 4, kind: input, shape index: {}]   ;;  %s3294_s5 = inlined_call_operand.vmem [shape: f32[8,8], index: 5, kind: input, shape index: {}]   ;;  %s3295_s6 = inlined_call_operand.hbm [shape: f32[2,8,256], index: 6, kind: output, shape index: {}]  }
   0x1   :  { %13 = vsyncpa [#allocation4 + $0x1], 0 }
   0x2   :  { %14 = vsyncpa [#allocation5], 0 }
   0x3   :  { %16 = vsyncpa [#allocation5 + $0x1], 0  ;;  %s2157_s21 = smov 0   ;;  %s2159_s22 = smov 0  }
   0x4   :  { %s2161_s23 = smov 0   ;;  %s2163_s24 = smov 0  }
   0x5 LB: > { %s2178_s25 = sadd.s32 4294967295, %s2056_s24   ;;  %s1771_s26 = sadd.s32 4294967294, %s2056_s24   ;;  %s2056_s24 = sphi %s2163_s24, %s3363_s24   ;;  %s2052_s23 = sphi %s2161_s23, %s3362_s23   ;;  %s2048_s22 = sphi %s2159_s22, %s3361_s22   ;;  %s2044_s21 = sphi %s2157_s21, %s3360_s21  }
   0x6   : > { %s2182_s27 = sadd.s32 1, %s2056_s24   ;;  %s29_s28 = sadd.s32 1, %s2052_s23 }
   0x7   : > { %s26_s29 = ssub.s32 %s2056_s24, %s2182_s27  ;;  %p36_p0 = scmp.ne.s32.totalorder %s2052_s23, %s2048_s22 }
   0x8   : > { %p27_p1 = scmp.eq.s32.totalorder %s26_s29, 0  ;;  %p37_p2 = scmp.eq.s32.totalorder %s2056_s24, 0 }
   0x9   : > { %p42_p3 = scmp.ne.s32.totalorder %s2048_s22, %s2044_s21  ;;  %p43_p4 = scmp.eq.s32.totalorder %s2178_s25, 0 }
   0xa   : > { %s2194_s30 = scalar_select %p27_p1, %s2052_s23, %s29_s28  }
   0xb   : > { %p2196_p5 = por %p37_p2, %p36_p0  ;;  %p2200_p6 = por %p43_p4, %p42_p3 }
   0xc   : > { %p171_p7 = scmp.eq.s32.totalorder %s2178_s25, 1  ;;  %p177_p8 = scmp.eq.s32.totalorder %s1771_s26, 1 }
   0xd   : > { %p1805_p10 = scmp.lt.s32.totalorder %s2056_s24, 2  ;;  %s212_s11 = sand.u32 1, %s2052_s23  }
   0xe   : > { %p2207_p11 = por %p171_p7, %p36_p0  ;;  %p2211_p12 = por %p177_p8, %p42_p3 }
   0xf   : > { %s1787_s12 = sshll.u32 %s2056_s24, 8  ;;  %s1774_s13 = sshll.u32 %s212_s11, 4 }
  0x10   : > { %s3312_s9 = scalar_select %p2207_p11, 1, 0 }
  0x11   : > { %s3313_s10 = scalar_select %p2211_p12, 1, 0 }
  0x12   : > { %s2220_s16 = scalar_lea.hbm %s3289_s0, %s1787_s12  ;;  %s216_s17 = scalar_lea.vmem [#allocation3], %s1774_s13 }
  0x13   : > { %s224_s18 = sshll.u32 %s216_s17, 4  ;;  %p2224_p13 = pnand %p1805_p10, %p2196_p5  ;;  %s2228_s18 = int_to_ptr.vmem [resolvable:$true] %s224_s18 }
  0x14   : > { %s213_s20 = scalar_lea.sflag [#allocation4], %s212_s11  ;;  %s1960_s26 = scalar_lea.hbm %s2220_s16, 256 }
  0x15   : > { %p1961_p2 = scmp.ne.s32.totalorder %s2220_s16, %s1960_s26  ;;  %p1962_p3 = pneg %p2224_p13 }
  0x16   : > { %s1965_s7 = scalar_lea.hbm %s3289_s0, 512  ;;  %p1966_p5 = scmp.lt.u32.totalorder %s2220_s16, %s3289_s0 }
  0x17   : > { %p1963_p4 = pnand %p1962_p3, %p1961_p2  ;;  %p1967_p8 = scmp.lt.u32.totalorder %s1965_s7, %s1960_s26 }
  0x18   : > { %p1969_p9 = scmp.lt.u32.totalorder %s1960_s26, %s2220_s16 }
  0x19   : > { %p1964_p7 = pneg %p1963_p4  ;;  %p1968_p10 = por %p1967_p8, %p1966_p5 }
  0x1b   : > { %p1970_p0 = por %p1969_p9, %p1968_p10 }
  0x1d   : > { %p1971_p1 = pnand %p1970_p0, %p1964_p7 }
  0x1f   : > { %1974 = shalt.err (!%p1971_p1)
}
  0x20   : > { %s1975_s11 = scalar_lea.vmem %s2228_s18, 256  ;;  %s2058_s14 = smov [#allocation3]  }
  0x21   : > { %p1976_p2 = scmp.ne.s32.totalorder %s2228_s18, %s1975_s11  ;;  %s1980_s15 = sshll.u32 %s2058_s14, 4  ;;  %s1981_s15 = int_to_ptr.vmem [resolvable:$false] %s1980_s15 }
  0x22   : > { %s1982_s17 = scalar_lea.vmem %s1981_s15, 512  ;;  %p1983_p11 = scmp.lt.s32.totalorder %s2228_s18, %s1981_s15 }
  0x23   : > { %p1978_p4 = pnand %p1976_p2, %p1962_p3  ;;  %p1984_p5 = scmp.lt.s32.totalorder %s1982_s17, %s1975_s11 }
  0x25   : > { %p1979_p12 = pneg %p1978_p4  ;;  %p1985_p8 = por %p1984_p5, %p1983_p11 }
  0x27   : > { %p1986_p9 = pnand %p1985_p8, %p1979_p12 }
  0x29   : > { %1989 = shalt.err (!%p1986_p9)
}
  0x2a   : > { %1800 = dma.hbm_to_vmem [thread:$0]  (!%p2224_p13), %s2220_s16, 256, %s2228_s18, %s213_s20  }
  0x2b   : > { %p3315_p0 = scmp.lt.s32.totalorder %s2056_s24, 3  ;;  %p3316_p1 = scmp.ge.s32.totalorder %s2056_s24, 1 }
  0x2d   : > { %p230_p3 = pnand %p3316_p1, %p3315_p0 }
  0x2f   : > { %233 = sbr.rel (%p230_p3) target bundleno = 1618 (0x652), region = 44 }
  0x36   : > { %s2262_s26 = sand.u32 1, %s2048_s22  }
  0x37   : > { %s1778_s28 = sshll.u32 %s2262_s26, 4  ;;  %s236_s29 = scalar_lea.sflag [#allocation4], %s2262_s26 }
  0x38   : > { %s2268_s19 = scalar_lea.vmem [#allocation3], %s1778_s28 }
  0x39   : > { %2035 = dma.done.wait (%p2200_p6), %s236_s29, 256  }
  0x3a   : > { %2037 = vsyncadd (%p2200_p6), %s236_s29, 4294967040  ;;  %v2059_v0 = vmov 14   ;;  %v2060_v1 = vmov 7   ;;  %v2277_v2 = vld [vmem:[%s3290_s1] sm:$0xff]  ;;  %v2061_v3 = vmov 15   ;;  %v2062_v4 = vmov 8  }
  0x3b   : > { %1903 = vset.pattern.permute.xlu1 %v2059_v0  ;;  %1901 = vset.pattern.permute.xlu0 %v2060_v1  ;;  %v2063_v5 = vmov 9   ;;  %v2064_v6 = vmov 21   ;;  %v2065_v7 = vmov 22   ;;  %v2066_v8 = vmov 10   ;;  %v2322_v47 = vld [vmem:[%s2268_s19 + $0x8] sm:$0xff]  ;;  %s2103_s8 = smov 112  }
  0x3c   : > { %333 = vperm.xlu1 %1903, %v2277_v2   ;;  %308 = vperm.xlu0 %1901, %v2277_v2   ;;  %v2067_v9 = vmov 16   ;;  %v2068_v10 = vmov 23   ;;  %v2069_v11 = vmov 28   ;;  %v2070_v12 = vmov 35   ;;  %v2328_v52 = vld [vmem:[%s2268_s19] sm:$0xff]  ;;  %s2107_s20 = smov 96  }
  0x3d   : > { %v2071_v13 = vmov 29   ;;  %v2072_v14 = vmov 18   ;;  %v2073_v15 = vmov 11   ;;  %v2074_v16 = vmov 42   ;;  %s2110_s7 = smov 80   ;;  %s2111_s12 = smov 64  }
  0x3e   : > { %v2075_v17 = vmov 17   ;;  %v2076_v18 = vmov 25   ;;  %v2077_v19 = vmov 36   ;;  %v2078_v20 = vmov 31   ;;  %s2112_s13 = smov 48   ;;  %s2113_s11 = smov 32  }
  0x3f   : > { %v2079_v21 = vmov 30   ;;  %v2080_v22 = vmov 26   ;;  %v2081_v23 = vmov 12   ;;  %v2082_v24 = vmov 39   ;;  %s2114_s14 = smov 51   ;;  %s2115_s15 = smov 50  }
  0x40   : > { %1904 = vset.pattern.permute.xlu1 %v2061_v3  ;;  %1902 = vset.pattern.permute.xlu0 %v2062_v4  ;;  %v2083_v25 = vmov 24   ;;  %v2084_v26 = vmov 45   ;;  %v2085_v27 = vmov 43   ;;  %v2086_v28 = vmov 34   ;;  %s2116_s17 = smov 49   ;;  %s2117_s29 = smov 47  }
  0x41   : > { %508 = vperm.xlu1 %1904, %v2277_v2   ;;  %484 = vperm.xlu0 %1902, %v2277_v2   ;;  %v2087_v29 = vmov 37   ;;  %v2088_v30 = vmov 48   ;;  %v2089_v31 = vmov 19   ;;  %v2090_v32 = vmov 2   ;;  %s1788_s16 = sshll.u32 %s2178_s25, 8  ;;  %s267_s18 = scalar_lea.vmem [#allocation6], %s1778_s28 }
  0x42   : > { %v2091_v33 = vmov 13   ;;  %v2092_v34 = vmov 5   ;;  %v2093_v35 = vmov 44   ;;  %v2094_v36 = vmov 32   ;;  %s1687_s25 = scalar_lea.sflag [#allocation5], %s2262_s26  ;;  %p3357_p11 = scmp.ne.s32.totalorder %s3312_s9, 0 }
  0x43   : > { %v2095_v37 = vmov 20   ;;  %v2096_v38 = vmov 38   ;;  %v2097_v39 = vmov 33   ;;  %v2098_v40 = vmov 27   ;;  %s2121_s28 = smov [#allocation6]  }
  0x44   : > { %v2099_v41 = vmov 46   ;;  %v2100_v42 = vmov 40   ;;  %v2101_v43 = vmov 47   ;;  %v2102_v48 = vmov 41  }
  0x45   : > { %1905 = vset.pattern.permute.xlu1 %v2063_v5  ;;  %1906 = vset.pattern.permute.xlu0 %v2064_v6  ;;  %v2104_v53 = vmov 0   ;;  %v2105_v56 = vmov 1   ;;  %v2106_v58 = vmov 3   ;;  %v2108_v62 = vmov 4  }
  0x46   : > { %653 = vperm.xlu1 %1905, %v2277_v2   ;;  %358 = vperm.xlu0 %1906, %v2277_v2   ;;  %v2109_v5 = vmov 6   ;;  %vm323_vm0 = vcmask 916480   ;;  %vm348_vm1 = vcmask 785408   ;;  %vm373_vm2 = vcmask 654336  }
  0x47   : > { %vm401_vm3 = vcmask 523264   ;;  %vm426_vm4 = vcmask 392192   ;;  %vm451_vm5 = vcmask 261120   ;;  %vm636_vm6 = vcmask 408576  }
  0x48   : > { %vm469_vm7 = vcmask 416768   ;;  %vm805_vm8 = vcmask 400384   ;;  %vm1135_vm13 = vcmask 384000  }
  0x4a   : > { %1907 = vset.pattern.permute.xlu1 %v2065_v7  ;;  %1909 = vset.pattern.permute.xlu0 %v2066_v8 }
  0x4b   : > { %532 = vperm.xlu1 %1907, %v2277_v2   ;;  %822 = vperm.xlu0 %1909, %v2277_v2  }
  0x4f   : > { %1908 = vset.pattern.permute.xlu1 %v2067_v9  ;;  %1912 = vset.pattern.permute.xlu0 %v2068_v10 }
  0x50   : > { %677 = vperm.xlu1 %1908, %v2277_v2   ;;  %701 = vperm.xlu0 %1912, %v2277_v2  }
  0x54   : > { %1910 = vset.pattern.permute.xlu1 %v2069_v11  ;;  %1915 = vset.pattern.permute.xlu0 %v2070_v12 }
  0x55   : > { %386 = vperm.xlu1 %1910, %v2277_v2   ;;  %411 = vperm.xlu0 %1915, %v2277_v2  }
  0x59   : > { %1911 = vset.pattern.permute.xlu1 %v2071_v13  ;;  %1918 = vset.pattern.permute.xlu0 %v2072_v14 }
  0x5a   : > { %556 = vperm.xlu1 %1911, %v2277_v2   ;;  %1007 = vperm.xlu0 %1918, %v2277_v2  }
  0x5e   : > { %1913 = vset.pattern.permute.xlu1 %v2073_v15  ;;  %1921 = vset.pattern.permute.xlu0 %v2074_v16 }
  0x5f   : > { %983 = vperm.xlu1 %1913, %v2277_v2   ;;  %436 = vperm.xlu0 %1921, %v2277_v2  }
  0x63   : > { %1914 = vset.pattern.permute.xlu1 %v2075_v17  ;;  %1924 = vset.pattern.permute.xlu0 %v2076_v18 }
  0x64   : > { %846 = vperm.xlu1 %1914, %v2277_v2   ;;  %1031 = vperm.xlu0 %1924, %v2277_v2  }
  0x68   : > { %1916 = vset.pattern.permute.xlu1 %v2077_v19  ;;  %1927 = vset.pattern.permute.xlu0 %v2078_v20 }
  0x69   : > { %580 = vperm.xlu1 %1916, %v2277_v2   ;;  %889 = vperm.xlu0 %1927, %v2277_v2  }
  0x6d   : > { %1917 = vset.pattern.permute.xlu1 %v2079_v21  ;;  %1930 = vset.pattern.permute.xlu0 %v2080_v22 }
  0x6e   : > { %725 = vperm.xlu1 %1917, %v2277_v2   ;;  %1200 = vperm.xlu0 %1930, %v2277_v2  }
  0x72   : > { %1919 = vset.pattern.permute.xlu1 %v2081_v23  ;;  %1933 = vset.pattern.permute.xlu0 %v2082_v24 }
  0x73   : > { %1152 = vperm.xlu1 %1919, %v2277_v2   ;;  %1079 = vperm.xlu0 %1933, %v2277_v2  }
  0x77   : > { %1920 = vset.pattern.permute.xlu1 %v2083_v25  ;;  %1936 = vset.pattern.permute.xlu0 %v2084_v26 }
  0x78   : > { %870 = vperm.xlu1 %1920, %v2277_v2   ;;  %937 = vperm.xlu0 %1936, %v2277_v2  }
  0x7c   : > { %1922 = vset.pattern.permute.xlu1 %v2085_v27  ;;  %1939 = vset.pattern.permute.xlu0 %v2086_v28 }
  0x7d   : > { %604 = vperm.xlu1 %1922, %v2277_v2   ;;  %1393 = vperm.xlu0 %1939, %v2277_v2  }
  0x81   : > { %1923 = vset.pattern.permute.xlu1 %v2087_v29  ;;  %1942 = vset.pattern.permute.xlu0 %v2088_v30 }
  0x82   : > { %749 = vperm.xlu1 %1923, %v2277_v2   ;;  %1441 = vperm.xlu0 %1942, %v2277_v2  }
  0x86   : > { %1925 = vset.pattern.permute.xlu1 %v2089_v31  ;;  %1945 = vset.pattern.permute.xlu0 %v2090_v32 }
  0x87   : > { %1176 = vperm.xlu1 %1925, %v2277_v2   ;;  %646 = vperm.xlu0 %1945, %v2277_v2  }
  0x8b   : > { %1926 = vset.pattern.permute.xlu1 %v2091_v33  ;;  %1948 = vset.pattern.permute.xlu0 %v2092_v34 }
  0x8c   : > { %1321 = vperm.xlu1 %1926, %v2277_v2  }
  0x90   : > { %1928 = vset.pattern.permute.xlu1 %v2093_v35 }
  0x91   : > { %773 = vperm.xlu1 %1928, %v2277_v2  }
  0x95   : > { %1929 = vset.pattern.permute.xlu1 %v2094_v36 }
  0x96   : > { %1055 = vperm.xlu1 %1929, %v2277_v2  }
  0x9a   : > { %1931 = vset.pattern.permute.xlu1 %v2095_v37 }
  0x9b   : > { %1345 = vperm.xlu1 %1931, %v2277_v2  }
  0x9f   : > { %1932 = vset.pattern.permute.xlu1 %v2096_v38 }
  0xa0   : > { %913 = vperm.xlu1 %1932, %v2277_v2  }
  0xa4   : > { %1934 = vset.pattern.permute.xlu1 %v2097_v39 }
  0xa5   : > { %1224 = vperm.xlu1 %1934, %v2277_v2  }
  0xa9   : > { %1935 = vset.pattern.permute.xlu1 %v2098_v40 }
  0xaa   : > { %1369 = vperm.xlu1 %1935, %v2277_v2  }
  0xae   : > { %1937 = vset.pattern.permute.xlu1 %v2099_v41 }
  0xaf   : > { %1103 = vperm.xlu1 %1937, %v2277_v2  }
  0xb3   : > { %1938 = vset.pattern.permute.xlu1 %v2100_v42 }
  0xb4   : > { %1248 = vperm.xlu1 %1938, %v2277_v2  }
  0xb8   : > { %1940 = vset.pattern.permute.xlu1 %v2101_v43 }
  0xb9   : > { %1272 = vperm.xlu1 %1940, %v2277_v2  }
  0xbb   : > { %v334_v44 = vpop.permute.xlu1 %333  ;;  %v309_v45 = vpop.permute.xlu0 %308 }
  0xbc   : > { %v311_v46 = vmul.f32 0.0, %v309_v45  ;;  %v313_v49 = vmul.f32 %v309_v45, %v2322_v47  ;;  %v338_v59 = vmul.f32 %v334_v44, %v2322_v47  ;;  %v312_v63 = vmul.f32 %v309_v45, %v2328_v52 }
  0xbd   : > { %1941 = vset.pattern.permute.xlu1 %v2102_v48  ;;  %v336_v12 = vmul.f32 0.0, %v334_v44  ;;  %v337_v14 = vmul.f32 %v334_v44, %v2328_v52 }
  0xbe   : > { %1417 = vperm.xlu1 %1941, %v2277_v2   ;;  %317 = vrot.lane.b32.xlu0 %v311_v46, %s2103_s8 }
  0xc0   : > { %v509_v50 = vpop.permute.xlu1 %508  ;;  %v485_v51 = vpop.permute.xlu0 %484 }
  0xc1   : > { %v488_v54 = vmul.f32 %v485_v51, %v2328_v52  ;;  %v512_v61 = vmul.f32 %v509_v50, %v2328_v52  ;;  %v487_v3 = vmul.f32 0.0, %v485_v51  ;;  %v489_v9 = vmul.f32 %v485_v51, %v2322_v47 }
  0xc2   : > { %1943 = vset.pattern.permute.xlu1 %v2104_v53  ;;  %321 = vrot.lane.b32.xlu0 %v313_v49, %s2103_s8  ;;  %v511_v17 = vmul.f32 0.0, %v509_v50  ;;  %v513_v20 = vmul.f32 %v509_v50, %v2322_v47 }
  0xc3   : > { %301 = vperm.xlu1 %1943, %v2277_v2  }
  0xc5   : > { %v654_v55 = vpop.permute.xlu1 %653  ;;  %v359_v4 = vpop.permute.xlu0 %358 }
  0xc6   : > { %495 = vrot.lane.b32.xlu0 %v488_v54, %s2103_s8  ;;  %v656_v1 = vmul.f32 0.0, %v654_v55  ;;  %v658_v6 = vmul.f32 %v654_v55, %v2322_v47  ;;  %v361_v8 = vmul.f32 0.0, %v359_v4  ;;  %v363_v11 = vmul.f32 %v359_v4, %v2322_v47 }
  0xc7   : > { %1944 = vset.pattern.permute.xlu1 %v2105_v56  ;;  %v657_v24 = vmul.f32 %v654_v55, %v2328_v52  ;;  %v362_v29 = vmul.f32 %v359_v4, %v2328_v52 }
  0xc8   : > { %477 = vperm.xlu1 %1944, %v2277_v2  }
  0xca   : > { %v2336_v57 = vpop.permute.xlu1 %532  ;;  %1145 = vperm.xlu0 %1948, %v2277_v2   ;;  %v823_v19 = vpop.permute.xlu0 %822 }
  0xcb   : > { %v536_v15 = vmul.f32 %v2336_v57, %v2328_v52  ;;  %v826_v23 = vmul.f32 %v823_v19, %v2328_v52  ;;  %v537_v36 = vmul.f32 %v2336_v57, %v2322_v47  ;;  %v825_v42 = vmul.f32 0.0, %v823_v19 }
  0xcc   : > { %1946 = vset.pattern.permute.xlu1 %v2106_v58  ;;  %v827_v45 = vmul.f32 %v823_v19, %v2322_v47 }
  0xcd   : > { %815 = vperm.xlu1 %1946, %v2277_v2  }
  0xce   : > { %346 = vrot.lane.b32.xlu0 %v338_v59, %s2107_s20 }
  0xcf   : > { %v2342_v60 = vpop.permute.xlu1 %677  ;;  %1951 = vset.pattern.permute.xlu0 %v2104_v53  ;;  %v702_v25 = vpop.permute.xlu0 %701 }
  0xd0   : > { %v680_v18 = vmul.f32 0.0, %v2342_v60  ;;  %v682_v21 = vmul.f32 %v2342_v60, %v2322_v47  ;;  %v704_v35 = vmul.f32 0.0, %v702_v25  ;;  %v706_v39 = vmul.f32 %v702_v25, %v2322_v47 }
  0xd1   : > { %1947 = vset.pattern.permute.xlu1 %v2108_v62  ;;  %v681_v40 = vmul.f32 %v2342_v60, %v2328_v52 }
  0xd2   : > { %976 = vperm.xlu1 %1947, %v2277_v2   ;;  %519 = vrot.lane.b32.xlu0 %v512_v61, %s2107_s20  ;;  %v705_v61 = vmul.f32 %v702_v25, %v2328_v52 }
  0xd4   : > { %v2349_v0 = vpop.permute.xlu1 %386  ;;  %v2393_v28 = vpop.permute.xlu0 %411 }
  0xd5   : > { %v389_v27 = vmul.f32 %v2349_v0, %v2328_v52  ;;  %v391_v31 = vmul.f32 0.0, %v2349_v0  ;;  %v390_v51 = vmul.f32 %v2349_v0, %v2322_v47  ;;  %v415_v54 = vmul.f32 %v2393_v28, %v2322_v47 }
  0xd6   : > { %319 = vrot.lane.b32.xlu1 %v312_v63, %s2103_s8  ;;  %662 = vrot.lane.b32.xlu0 %v656_v1, %s2103_s8 }
  0xd7   : > { %1949 = vset.pattern.permute.xlu1 %v2109_v5 }
  0xd9   : > { %v2354_v7 = vpop.permute.xlu1 %556  ;;  %v2403_v32 = vpop.permute.xlu0 %1007 }
  0xda   : > { %493 = vrot.lane.b32.xlu1 %v487_v3, %s2103_s8  ;;  %666 = vrot.lane.b32.xlu0 %v658_v6, %s2103_s8  ;;  %v560_v34 = vmul.f32 %v2354_v7, %v2322_v47  ;;  %v559_v56 = vmul.f32 %v2354_v7, %v2328_v52  ;;  %v561_v58 = vmul.f32 0.0, %v2354_v7  ;;  %v1010_v5 = vmul.f32 0.0, %v2403_v32 }
  0xde   : > { %v2359_v10 = vpop.permute.xlu1 %983  ;;  %497 = vrot.lane.b32.xlu1 %v489_v9, %s2103_s8  ;;  %367 = vrot.lane.b32.xlu0 %v361_v8, %s2110_s7  ;;  %v2417_v38 = vpop.permute.xlu0 %436  ;;  %v1012_v9 = vmul.f32 %v2403_v32, %v2322_v47 }
  0xdf   : > { %v987_v44 = vmul.f32 %v2359_v10, %v2328_v52  ;;  %v986_v3 = vmul.f32 0.0, %v2359_v10  ;;  %v988_v6 = vmul.f32 %v2359_v10, %v2322_v47 }
  0xe2   : > { %342 = vrot.lane.b32.xlu1 %v336_v12, %s2107_s20  ;;  %371 = vrot.lane.b32.xlu0 %v363_v11, %s2110_s7 }
  0xe3   : > { %v2366_v13 = vpop.permute.xlu1 %846  ;;  %v2428_v43 = vpop.permute.xlu0 %1031 }
  0xe4   : > { %v849_v48 = vmul.f32 0.0, %v2366_v13  ;;  %v850_v11 = vmul.f32 %v2366_v13, %v2328_v52 }
  0xe6   : > { %344 = vrot.lane.b32.xlu1 %v337_v14, %s2107_s20  ;;  %543 = vrot.lane.b32.xlu0 %v536_v15, %s2110_s7  ;;  %v414_v14 = vmul.f32 %v2393_v28, %v2328_v52 }
  0xe8   : > { %v2373_v16 = vpop.permute.xlu1 %580  ;;  %v2438_v49 = vpop.permute.xlu0 %889 }
  0xe9   : > { %v583_v59 = vmul.f32 %v2373_v16, %v2328_v52  ;;  %v585_v63 = vmul.f32 0.0, %v2373_v16 }
  0xea   : > { %517 = vrot.lane.b32.xlu1 %v511_v17, %s2107_s20  ;;  %686 = vrot.lane.b32.xlu0 %v680_v18, %s2107_s20  ;;  %v416_v18 = vmul.f32 0.0, %v2393_v28  ;;  %v441_v28 = vmul.f32 0.0, %v2417_v38 }
  0xed   : > { %v2381_v22 = vpop.permute.xlu1 %725  ;;  %v2452_v55 = vpop.permute.xlu0 %1200 }
  0xee   : > { %521 = vrot.lane.b32.xlu1 %v513_v20, %s2107_s20  ;;  %690 = vrot.lane.b32.xlu0 %v682_v21, %s2107_s20  ;;  %v729_v4 = vmul.f32 %v2381_v22, %v2322_v47  ;;  %v584_v21 = vmul.f32 %v2373_v16, %v2322_v47  ;;  %v728_v25 = vmul.f32 %v2381_v22, %v2328_v52  ;;  %v730_v16 = vmul.f32 0.0, %v2381_v22 }
  0xf2   : > { %v2387_v26 = vpop.permute.xlu1 %1152  ;;  %664 = vrot.lane.b32.xlu1 %v657_v24, %s2103_s8  ;;  %833 = vrot.lane.b32.xlu0 %v826_v23, %s2103_s8  ;;  %v2463_v60 = vpop.permute.xlu0 %1079  ;;  %v439_v23 = vmul.f32 %v2417_v38, %v2328_v52 }
  0xf3   : > { %v1156_v15 = vmul.f32 %v2387_v26, %v2328_v52 }
  0xf6   : > { %1314 = vperm.xlu1 %1949, %v2277_v2   ;;  %395 = vrot.lane.b32.xlu0 %v389_v27, %s2111_s12  ;;  %v535_v2 = vmul.f32 0.0, %v2336_v57 }
  0xf7   : > { %v2398_v30 = vpop.permute.xlu1 %870  ;;  %v2475_v1 = vpop.permute.xlu0 %937 }
  0xfa   : > { %369 = vrot.lane.b32.xlu1 %v362_v29, %s2110_s7  ;;  %399 = vrot.lane.b32.xlu0 %v391_v31, %s2111_s12 }
  0xfb   : > { %1950 = vset.pattern.permute.xlu1 %v2104_v53  ;;  %v851_v53 = vmul.f32 %v2366_v13, %v2322_v47  ;;  %v873_v13 = vmul.f32 %v2398_v30, %v2328_v52 }
  0xfc   : > { %v2406_v33 = vpop.permute.xlu1 %604  ;;  %v2487_v8 = vpop.permute.xlu0 %1393 }
  0xfd   : > { %v608_v29 = vmul.f32 %v2406_v33, %v2322_v47 }
  0xfe   : > { %541 = vrot.lane.b32.xlu1 %v535_v2, %s2110_s7  ;;  %567 = vrot.lane.b32.xlu0 %v560_v34, %s2111_s12 }
 0x101   : > { %v2415_v37 = vpop.permute.xlu1 %749  ;;  %v2499_v10 = vpop.permute.xlu0 %1441 }
 0x102   : > { %545 = vrot.lane.b32.xlu1 %v537_v36, %s2110_s7  ;;  %710 = vrot.lane.b32.xlu0 %v704_v35, %s2110_s7  ;;  %v752_v34 = vmul.f32 %v2415_v37, %v2328_v52  ;;  %v1011_v35 = vmul.f32 %v2403_v32, %v2328_v52  ;;  %v1157_v32 = vmul.f32 %v2387_v26, %v2322_v47 }
 0x106   : > { %v2424_v41 = vpop.permute.xlu1 %1176  ;;  %688 = vrot.lane.b32.xlu1 %v681_v40, %s2107_s20  ;;  %714 = vrot.lane.b32.xlu0 %v706_v39, %s2110_s7  ;;  %v2512_v19 = vpop.permute.xlu0 %646  ;;  %v1155_v39 = vmul.f32 0.0, %v2387_v26  ;;  %v754_v40 = vmul.f32 0.0, %v2415_v37 }
 0x107   : > { %v1181_v26 = vmul.f32 %v2424_v41, %v2322_v47 }
 0x10a   : > { %831 = vrot.lane.b32.xlu1 %v825_v42, %s2103_s8  ;;  %994 = vrot.lane.b32.xlu0 %v987_v44, %s2103_s8  ;;  %v1035_v44 = vmul.f32 %v2428_v43, %v2322_v47 }
 0x10b   : > { %v2435_v46 = vpop.permute.xlu1 %1321 }
 0x10e   : > { %835 = vrot.lane.b32.xlu1 %v827_v45, %s2103_s8  ;;  %855 = vrot.lane.b32.xlu0 %v849_v48, %s2107_s20  ;;  %v874_v48 = vmul.f32 %v2398_v30, %v2322_v47  ;;  %v607_v30 = vmul.f32 %v2406_v33, %v2328_v52 }
 0x110   : > { %v2442_v50 = vpop.permute.xlu1 %773 }
 0x112   : > { %397 = vrot.lane.b32.xlu1 %v390_v51, %s2111_s12  ;;  %859 = vrot.lane.b32.xlu0 %v851_v53, %s2107_s20  ;;  %v1179_v51 = vmul.f32 0.0, %v2424_v41 }
 0x115   : > { %v2456_v57 = vpop.permute.xlu1 %1055 }
 0x116   : > { %565 = vrot.lane.b32.xlu1 %v559_v56, %s2111_s12  ;;  %422 = vrot.lane.b32.xlu0 %v415_v54, %s2112_s13  ;;  %v440_v56 = vmul.f32 %v2417_v38, %v2322_v47  ;;  %v609_v38 = vmul.f32 0.0, %v2406_v33  ;;  %v777_v33 = vmul.f32 %v2442_v50, %v2322_v47 }
 0x11a   : > { %v2466_v62 = vpop.permute.xlu1 %1345  ;;  %569 = vrot.lane.b32.xlu1 %v561_v58, %s2111_s12  ;;  %589 = vrot.lane.b32.xlu0 %v583_v59, %s2112_s13 }
 0x11e   : > { %712 = vrot.lane.b32.xlu1 %v705_v61, %s2110_s7  ;;  %593 = vrot.lane.b32.xlu0 %v585_v63, %s2112_s13  ;;  %v1325_v61 = vmul.f32 %v2435_v46, %v2328_v52 }
 0x11f   : > { %v2473_v0 = vpop.permute.xlu1 %913 }
 0x122   : > { %992 = vrot.lane.b32.xlu1 %v986_v3, %s2103_s8  ;;  %736 = vrot.lane.b32.xlu0 %v729_v4, %s2111_s12  ;;  %v892_v4 = vmul.f32 %v2438_v49, %v2328_v52 }
 0x124   : > { %v2485_v7 = vpop.permute.xlu1 %1224 }
 0x126   : > { %996 = vrot.lane.b32.xlu1 %v988_v6, %s2103_s8  ;;  %1016 = vrot.lane.b32.xlu0 %v1010_v5, %s2107_s20 }
 0x129   : > { %v2495_v12 = vpop.permute.xlu1 %1369 }
 0x12a   : > { %857 = vrot.lane.b32.xlu1 %v850_v11, %s2107_s20  ;;  %1020 = vrot.lane.b32.xlu0 %v1012_v9, %s2107_s20  ;;  %v753_v9 = vmul.f32 %v2415_v37, %v2322_v47  ;;  %v894_v11 = vmul.f32 0.0, %v2438_v49  ;;  %v1058_v37 = vmul.f32 %v2456_v57, %v2328_v52 }
 0x12e   : > { %v2505_v17 = vpop.permute.xlu1 %1103  ;;  %420 = vrot.lane.b32.xlu1 %v414_v14, %s2112_s13  ;;  %1163 = vrot.lane.b32.xlu0 %v1156_v15, %s2103_s8 }
 0x130   : > { %v2524_v24 = vpop.permute.xlu0 %317 }
 0x132   : > { %424 = vrot.lane.b32.xlu1 %v416_v18, %s2112_s13  ;;  %877 = vrot.lane.b32.xlu0 %v873_v13, %s2110_s7  ;;  %v1034_v13 = vmul.f32 %v2428_v43, %v2328_v52 }
 0x133   : > { %v2516_v20 = vpop.permute.xlu1 %1248 }
 0x134   : > { %v2538_v2 = vpop.permute.xlu0 %321 }
 0x136   : > { %591 = vrot.lane.b32.xlu1 %v584_v21, %s2112_s13  ;;  %445 = vrot.lane.b32.xlu0 %v439_v23, %s2113_s11  ;;  %v1036_v23 = vmul.f32 0.0, %v2428_v43  ;;  %v1324_v43 = vmul.f32 0.0, %v2435_v46 }
 0x138   : > { %v2528_v27 = vpop.permute.xlu1 %1272  ;;  %v2550_v22 = vpop.permute.xlu0 %495 }
 0x13a   : > { %734 = vrot.lane.b32.xlu1 %v728_v25, %s2111_s12  ;;  %449 = vrot.lane.b32.xlu0 %v441_v28, %s2113_s11 }
 0x13d   : > { %v2536_v31 = vpop.permute.xlu1 %1417 }
 0x13e   : > { %738 = vrot.lane.b32.xlu1 %v730_v16, %s2111_s12  ;;  %615 = vrot.lane.b32.xlu0 %v608_v29, %s2113_s11  ;;  %v1180_v16 = vmul.f32 %v2424_v41, %v2328_v52  ;;  %v1060_v29 = vmul.f32 0.0, %v2456_v57  ;;  %v1326_v41 = vmul.f32 %v2435_v46, %v2322_v47  ;;  %v776_v46 = vmul.f32 %v2442_v50, %v2328_v52 }
 0x142   : > { %v2546_v36 = vpop.permute.xlu1 %301  ;;  %1018 = vrot.lane.b32.xlu1 %v1011_v35, %s2107_s20  ;;  %758 = vrot.lane.b32.xlu0 %v752_v34, %s2112_s13 }
 0x146   : > { %1161 = vrot.lane.b32.xlu1 %v1155_v39, %s2103_s8  ;;  %762 = vrot.lane.b32.xlu0 %v754_v40, %s2112_s13  ;;  %v1204_v39 = vmul.f32 %v2452_v55, %v2322_v47 }
 0x147   : > { %v2556_v42 = vpop.permute.xlu1 %477 }
 0x149   : > { %v2562_v45 = vpop.permute.xlu0 %1145 }
 0x14a   : > { %1165 = vrot.lane.b32.xlu1 %v1157_v32, %s2103_s8  ;;  %1042 = vrot.lane.b32.xlu0 %v1035_v44, %s2110_s7  ;;  %v1348_v44 = vmul.f32 0.0, %v2466_v62 }
 0x14c   : > { %v2569_v53 = vpop.permute.xlu1 %815 }
 0x14d   : > { %3317 = vst [vmem:[#allocation9_spill] sm:$0xff] %v2569_v53  ;;  %v2571_v54 = vpop.permute.xlu0 %346 }
 0x14e   : > { %879 = vrot.lane.b32.xlu1 %v874_v48, %s2110_s7  ;;  %1185 = vrot.lane.b32.xlu0 %v1179_v51, %s2107_s20 }
 0x151   : > { %v2579_v58 = vpop.permute.xlu1 %976  ;;  %v2581_v59 = vpop.permute.xlu0 %519 }
 0x152   : > { %447 = vrot.lane.b32.xlu1 %v440_v56, %s2113_s11  ;;  %1189 = vrot.lane.b32.xlu0 %v1181_v26, %s2107_s20  ;;  %v1350_v26 = vmul.f32 %v2466_v62, %v2322_v47  ;;  %v893_v56 = vmul.f32 %v2438_v49, %v2322_v47  ;;  %v778_v49 = vmul.f32 0.0, %v2442_v50  ;;  %v1228_v50 = vmul.f32 %v2485_v7, %v2322_v47 }
 0x155   : > { %v2589_v63 = vpop.permute.xlu1 %319  ;;  %v2591_v3 = vpop.permute.xlu0 %662 }
 0x156   : > { %613 = vrot.lane.b32.xlu1 %v607_v30, %s2113_s11  ;;  %1332 = vrot.lane.b32.xlu0 %v1325_v61, %s2103_s8 }
 0x159   : > { %v2598_v5 = vpop.permute.xlu1 %493  ;;  %v2600_v6 = vpop.permute.xlu0 %666 }
 0x15a   : > { %617 = vrot.lane.b32.xlu1 %v609_v38, %s2113_s11  ;;  %898 = vrot.lane.b32.xlu0 %v892_v4, %s2111_s12  ;;  %v917_v38 = vmul.f32 %v2473_v0, %v2322_v47 }
 0x15d   : > { %v2607_v14 = vpop.permute.xlu1 %497  ;;  %v2609_v15 = vpop.permute.xlu0 %367 }
 0x15e   : > { %760 = vrot.lane.b32.xlu1 %v753_v9, %s2112_s13  ;;  %902 = vrot.lane.b32.xlu0 %v894_v11, %s2111_s12  ;;  %v1082_v11 = vmul.f32 %v2463_v60, %v2328_v52 }
 0x161   : > { %v2617_v18 = vpop.permute.xlu1 %342  ;;  %v2619_v21 = vpop.permute.xlu0 %371 }
 0x162   : > { %1040 = vrot.lane.b32.xlu1 %v1034_v13, %s2110_s7  ;;  %784 = vrot.lane.b32.xlu0 %v777_v33, %s2113_s11 }
 0x165   : > { %v2626_v25 = vpop.permute.xlu1 %344  ;;  %v2628_v28 = vpop.permute.xlu0 %543 }
 0x166   : > { %1044 = vrot.lane.b32.xlu1 %v1036_v23, %s2110_s7  ;;  %1064 = vrot.lane.b32.xlu0 %v1058_v37, %s2111_s12  ;;  %v1059_v37 = vmul.f32 %v2456_v57, %v2322_v47  ;;  %v1084_v23 = vmul.f32 0.0, %v2463_v60  ;;  %v1205_v57 = vmul.f32 0.0, %v2452_v55 }
 0x169   : > { %v2635_v34 = vpop.permute.xlu1 %517  ;;  %v2637_v35 = vpop.permute.xlu0 %686 }
 0x16a   : > { %3318 = vst [vmem:[#allocation10_spill] sm:$0xff] %v2637_v35  ;;  %1187 = vrot.lane.b32.xlu1 %v1180_v16, %s2107_s20  ;;  %1068 = vrot.lane.b32.xlu0 %v1060_v29, %s2111_s12 }
 0x16d   : > { %v2644_v40 = vpop.permute.xlu1 %521  ;;  %v2646_v32 = vpop.permute.xlu0 %690 }
 0x16e   : > { %3319 = vst [vmem:[#allocation11_spill] sm:$0xff] %v2646_v32  ;;  %1330 = vrot.lane.b32.xlu1 %v1324_v43, %s2103_s8  ;;  %1211 = vrot.lane.b32.xlu0 %v1204_v39, %s2110_s7  ;;  %v1203_v43 = vmul.f32 %v2452_v55, %v2328_v52  ;;  %v916_v55 = vmul.f32 %v2473_v0, %v2328_v52 }
 0x16f   : > { %v482_v32 = vmul.f32 %v2556_v42, %v2322_v47 }
 0x171   : > { %v2653_v48 = vpop.permute.xlu1 %664  ;;  %v2655_v51 = vpop.permute.xlu0 %833 }
 0x172   : > { %3320 = vst [vmem:[#allocation12_spill] sm:$0xff] %v2655_v51  ;;  %1334 = vrot.lane.b32.xlu1 %v1326_v41, %s2103_s8  ;;  %1354 = vrot.lane.b32.xlu0 %v1348_v44, %s2107_s20  ;;  %v1372_v44 = vmul.f32 %v2495_v12, %v2328_v52  ;;  %s2118_s8 = smov 46  }
 0x175   : > { %v2663_v30 = vpop.permute.xlu1 %1314  ;;  %v2665_v61 = vpop.permute.xlu0 %395 }
 0x176   : > { %3321 = vst [vmem:[#allocation13_spill] sm:$0xff] %v2663_v30  ;;  %900 = vrot.lane.b32.xlu1 %v893_v56, %s2111_s12  ;;  %1358 = vrot.lane.b32.xlu0 %v1350_v26, %s2107_s20 }
 0x179   : > { %v2673_v4 = vpop.permute.xlu1 %369  ;;  %v2675_v9 = vpop.permute.xlu0 %399 }
 0x17a   : > { %782 = vrot.lane.b32.xlu1 %v776_v46, %s2113_s11  ;;  %924 = vrot.lane.b32.xlu0 %v917_v38, %s2112_s13  ;;  %v1349_v46 = vmul.f32 %v2466_v62, %v2328_v52  ;;  %v1374_v38 = vmul.f32 0.0, %v2495_v12  ;;  %v918_v62 = vmul.f32 0.0, %v2473_v0  ;;  %v1227_v0 = vmul.f32 %v2485_v7, %v2328_v52 }
 0x17d   : > { %v2682_v33 = vpop.permute.xlu1 %541  ;;  %v2684_v13 = vpop.permute.xlu0 %567 }
 0x17e   : > { %786 = vrot.lane.b32.xlu1 %v778_v49, %s2113_s11  ;;  %1088 = vrot.lane.b32.xlu0 %v1082_v11, %s2112_s13 }
 0x181   : > { %v2691_v16 = vpop.permute.xlu1 %545  ;;  %v2693_v29 = vpop.permute.xlu0 %710 }
 0x182   : > { %3322 = vst [vmem:[#allocation14_spill] sm:$0xff] %v2693_v29  ;;  %1066 = vrot.lane.b32.xlu1 %v1059_v37, %s2111_s12  ;;  %1092 = vrot.lane.b32.xlu0 %v1084_v23, %s2112_s13  ;;  %v941_v37 = vmul.f32 %v2475_v1, %v2322_v47 }
 0x185   : > { %v2701_v39 = vpop.permute.xlu1 %688  ;;  %v2703_v41 = vpop.permute.xlu0 %714 }
 0x186   : > { %3323 = vst [vmem:[#allocation15_spill] sm:$0xff] %v2703_v41  ;;  %1209 = vrot.lane.b32.xlu1 %v1203_v43, %s2110_s7  ;;  %1235 = vrot.lane.b32.xlu0 %v1228_v50, %s2111_s12  ;;  %v1106_v43 = vmul.f32 %v2505_v17, %v2328_v52 }
 0x189   : > { %v2710_v26 = vpop.permute.xlu1 %831  ;;  %v2712_v56 = vpop.permute.xlu0 %994 }
 0x18a   : > { %3324 = vst [vmem:[#allocation16_spill] sm:$0xff] %v2710_v26  ;;  %1213 = vrot.lane.b32.xlu1 %v1205_v57, %s2110_s7  ;;  %1378 = vrot.lane.b32.xlu0 %v1372_v44, %s2110_s7  ;;  %v304_v26 = vmul.f32 0.0, %v2546_v36 }
 0x18d   : > { %v2719_v49 = vpop.permute.xlu1 %835  ;;  %v2721_v11 = vpop.permute.xlu0 %855 }
 0x18e   : > { %3325 = vst [vmem:[#allocation17_spill] sm:$0xff] %v2719_v49  ;;  %3326 = vst [vmem:[#allocation18_spill] sm:$0xff] %v2721_v11  ;;  %1356 = vrot.lane.b32.xlu1 %v1349_v46, %s2107_s20  ;;  %1382 = vrot.lane.b32.xlu0 %v1374_v38, %s2110_s7  ;;  %v1083_v46 = vmul.f32 %v2463_v60, %v2322_v47  ;;  %v1108_v38 = vmul.f32 0.0, %v2505_v17  ;;  %v1229_v60 = vmul.f32 0.0, %v2485_v7  ;;  %s2119_s20 = smov 45  }
 0x18f   : > { %v1373_v11 = vmul.f32 %v2495_v12, %v2322_v47  ;;  %v940_v7 = vmul.f32 %v2475_v1, %v2328_v52  ;;  %v324_v12 = vsel %vm323_vm0, %v2524_v24, %v2589_v63  ;;  %v1420_v24 = vmul.f32 %v2536_v31, %v2328_v52 }
 0x190   : > { %v329_v51 = vadd.f32 %v324_v12, %v304_v26 }
 0x191   : > { %v2729_v23 = vpop.permute.xlu1 %397  ;;  %v2731_v50 = vpop.permute.xlu0 %859 }
 0x192   : > { %3327 = vst [vmem:[#allocation19_spill] sm:$0xff] %v2731_v50  ;;  %922 = vrot.lane.b32.xlu1 %v916_v55, %s2112_s13  ;;  %948 = vrot.lane.b32.xlu0 %v941_v37, %s2113_s11 }
 0x195   : > { %v2738_v57 = vpop.permute.xlu1 %565  ;;  %v2740_v44 = vpop.permute.xlu0 %422 }
 0x196   : > { %926 = vrot.lane.b32.xlu1 %v918_v62, %s2112_s13  ;;  %1112 = vrot.lane.b32.xlu0 %v1106_v43, %s2113_s11  ;;  %v1252_v62 = vmul.f32 %v2516_v20, %v2322_v47 }
 0x199   : > { %v2747_v55 = vpop.permute.xlu1 %569  ;;  %v2749_v37 = vpop.permute.xlu0 %589 }
 0x19a   : > { %1090 = vrot.lane.b32.xlu1 %v1083_v46, %s2112_s13  ;;  %1116 = vrot.lane.b32.xlu0 %v1108_v38, %s2113_s11  ;;  %v1396_v46 = vmul.f32 %v2487_v8, %v2328_v52 }
 0x19d   : > { %v2757_v43 = vpop.permute.xlu1 %712  ;;  %v2759_v30 = vpop.permute.xlu0 %593 }
 0x19e   : > { %3328 = vst [vmem:[#allocation20_spill] sm:$0xff] %v2757_v43  ;;  %1233 = vrot.lane.b32.xlu1 %v1227_v0, %s2111_s12  ;;  %1259 = vrot.lane.b32.xlu0 %v1252_v62, %s2112_s13  ;;  %v1398_v0 = vmul.f32 0.0, %v2487_v8 }
 0x1a1   : > { %v2766_v38 = vpop.permute.xlu1 %992  ;;  %v2768_v50 = vpop.permute.xlu0 %736 }
 0x1a2   : > { %3329 = vst [vmem:[#allocation21_spill] sm:$0xff] %v2768_v50  ;;  %1237 = vrot.lane.b32.xlu1 %v1229_v60, %s2111_s12  ;;  %1402 = vrot.lane.b32.xlu0 %v1396_v46, %s2111_s12  ;;  %v1276_v60 = vmul.f32 %v2528_v27, %v2322_v47 }
 0x1a5   : > { %v2775_v49 = vpop.permute.xlu1 %996  ;;  %v2777_v62 = vpop.permute.xlu0 %1016 }
 0x1a6   : > { %1380 = vrot.lane.b32.xlu1 %v1373_v11, %s2110_s7  ;;  %1406 = vrot.lane.b32.xlu0 %v1398_v0, %s2111_s12  ;;  %v349_v11 = vsel %vm348_vm1, %v2617_v18, %v2626_v25  ;;  %v942_v0 = vmul.f32 0.0, %v2475_v1  ;;  %v1107_v18 = vmul.f32 %v2505_v17, %v2322_v47  ;;  %v1422_v1 = vmul.f32 0.0, %v2536_v31 }
 0x1a9   : > { %v2788_v46 = vpop.permute.xlu1 %857  ;;  %v2790_v53 = vpop.permute.xlu0 %1020 }
 0x1aa   : > { %3330 = vst [vmem:[#allocation22_spill] sm:$0xff] %v2788_v46  ;;  %946 = vrot.lane.b32.xlu1 %v940_v7, %s2113_s11  ;;  %1283 = vrot.lane.b32.xlu0 %v1276_v60, %s2113_s11  ;;  %v374_v46 = vsel %vm373_vm2, %v2609_v15, %v2673_v4  ;;  %v354_v7 = vadd.f32 %v349_v11, %v329_v51 }
 0x1ab   : > { %v1251_v15 = vmul.f32 %v2516_v20, %v2328_v52  ;;  %v1445_v51 = vmul.f32 %v2499_v10, %v2322_v47 }
 0x1ac   : > { %v379_v60 = vadd.f32 %v374_v46, %v354_v7 }
 0x1ad   : > { %v2804_v50 = vpop.permute.xlu1 %420  ;;  %v1164_v41 = vpop.permute.xlu0 %1163 }
 0x1ae   : > { %950 = vrot.lane.b32.xlu1 %v942_v0, %s2113_s11  ;;  %1426 = vrot.lane.b32.xlu0 %v1420_v24, %s2112_s13  ;;  %v407_v12 = vadd.f32 %v2665_v61, %v379_v60  ;;  %v1253_v0 = vmul.f32 0.0, %v2516_v20  ;;  %v1275_v20 = vmul.f32 %v2528_v27, %v2328_v52 }
 0x1b0   : > { %v432_v46 = vadd.f32 %v2804_v50, %v407_v12 }
 0x1b1   : > { %v2811_v29 = vpop.permute.xlu1 %424  ;;  %v2813_v26 = vpop.permute.xlu0 %877 }
 0x1b2   : > { %1114 = vrot.lane.b32.xlu1 %v1107_v18, %s2113_s11  ;;  %1430 = vrot.lane.b32.xlu0 %v1422_v1, %s2112_s13  ;;  %v1397_v1 = vmul.f32 %v2487_v8, %v2322_v47  ;;  %v1277_v8 = vmul.f32 0.0, %v2528_v27  ;;  %v305_v27 = vmul.f32 %v2546_v36, %v2328_v52 }
 0x1b5   : > { %v2822_v17 = vpop.permute.xlu1 %591  ;;  %v2824_v11 = vpop.permute.xlu0 %445 }
 0x1b6   : > { %1257 = vrot.lane.b32.xlu1 %v1251_v15, %s2112_s13  ;;  %1452 = vrot.lane.b32.xlu0 %v1445_v51, %s2113_s11  ;;  %v457_v24 = vadd.f32 %v2824_v11, %v432_v46 }
 0x1b9   : > { %v2831_v7 = vpop.permute.xlu1 %734  ;;  %v2833_v18 = vpop.permute.xlu0 %449 }
 0x1ba   : > { %3331 = vst [vmem:[#allocation23_spill] sm:$0xff] %v2831_v7  ;;  %1261 = vrot.lane.b32.xlu1 %v1253_v0, %s2112_s13  ;;  %463 = vrot.lane.b32.xlu0 %v457_v24, %s2114_s14  ;;  %v306_v0 = vmul.f32 %v2546_v36, %v2322_v47  ;;  %v480_v36 = vmul.f32 0.0, %v2556_v42 }
 0x1bc   : > { %v331_v7 = vadd.f32 %v2538_v2, %v306_v0 }
 0x1bd   : > { %v2839_v60 = vpop.permute.xlu1 %738  ;;  %v2841_v15 = vpop.permute.xlu0 %615 }
 0x1be   : > { %3332 = vst [vmem:[#allocation24_spill] sm:$0xff] %v2839_v60  ;;  %1404 = vrot.lane.b32.xlu1 %v1397_v1, %s2111_s12  ;;  %v325_v60 = vsel %vm323_vm0, %v2589_v63, %v2538_v2  ;;  %v499_v63 = vsel %vm323_vm0, %v2598_v5, %v2550_v22  ;;  %v500_v2 = vsel %vm323_vm0, %v2550_v22, %v2607_v14  ;;  %s3245_s12 = scalar_lea.hbm %s3295_s6, %s1788_s16 }
 0x1bf   : > { %v330_v43 = vadd.f32 %v325_v60, %v305_v27  ;;  %v375_v5 = vsel %vm373_vm2, %v2673_v4, %v2619_v21  ;;  %v504_v0 = vadd.f32 %v499_v63, %v480_v36  ;;  %v523_v22 = vsel %vm348_vm1, %v2635_v34, %v2581_v59 }
 0x1c0   : > { %v524_v4 = vsel %vm348_vm1, %v2581_v59, %v2644_v40  ;;  %v547_v34 = vsel %vm373_vm2, %v2682_v33, %v2628_v28  ;;  %v548_v59 = vsel %vm373_vm2, %v2628_v28, %v2691_v16  ;;  %v1446_v28 = vmul.f32 0.0, %v2499_v10 }
 0x1c1   : > { %v2846_v51 = vpop.permute.xlu1 %1018  ;;  %v2848_v12 = vpop.permute.xlu0 %758  ;;  %v528_v33 = vadd.f32 %v523_v22, %v504_v0 }
 0x1c2   : > { %3333 = vst [vmem:[#allocation25_spill] sm:$0xff] %v2848_v12  ;;  %v2853_v46 = vsel %vm348_vm1, %v2846_v51, %v2790_v53  ;;  %1281 = vrot.lane.b32.xlu1 %v1275_v20, %s2113_s11  ;;  %v1444_v20 = vmul.f32 %v2499_v10, %v2328_v52 }
 0x1c5   : > { %v1162_v24 = vpop.permute.xlu1 %1161  ;;  %v2859_v1 = vpop.permute.xlu0 %762 }
 0x1c6   : > { %3334 = vst [vmem:[#allocation26_spill] sm:$0xff] %v2859_v1  ;;  %v2865_v12 = vsel %vm323_vm0, %v1162_v24, %v1164_v41  ;;  %1285 = vrot.lane.b32.xlu1 %v1277_v8, %s2113_s11  ;;  %v1421_v1 = vmul.f32 %v2536_v31, %v2322_v47  ;;  %v350_v8 = vsel %vm348_vm1, %v2626_v25, %v2571_v54 }
 0x1c7   : > { %v481_v24 = vmul.f32 %v2556_v42, %v2328_v52  ;;  %v1150_v25 = vmul.f32 %v2562_v45, %v2322_v47  ;;  %v356_v42 = vadd.f32 %v2571_v54, %v331_v7  ;;  %v355_v27 = vadd.f32 %v350_v8, %v330_v43 }
 0x1c9   : > { %v1166_v31 = vpop.permute.xlu1 %1165  ;;  %v2886_v35 = vpop.permute.xlu0 %1042  ;;  %v505_v54 = vadd.f32 %v500_v2, %v481_v24  ;;  %v381_v43 = vadd.f32 %v2619_v21, %v356_v42  ;;  %v380_v7 = vadd.f32 %v375_v5, %v355_v27  ;;  %v428_v21 = vsel %vm426_vm4, %v2740_v44, %v2811_v29 }
 0x1ca   : > { %v2897_v60 = vsel %vm323_vm0, %v1164_v41, %v1166_v31  ;;  %1428 = vrot.lane.b32.xlu1 %v1421_v1, %s2112_s13  ;;  %v402_v41 = vsel %vm401_vm3, %v2665_v61, %v2729_v23  ;;  %v403_v1 = vsel %vm401_vm3, %v2729_v23, %v2675_v9  ;;  %v427_v61 = vsel %vm426_vm4, %v2804_v50, %v2740_v44 }
 0x1cb   : > { %v529_v23 = vadd.f32 %v524_v4, %v505_v54  ;;  %v408_v24 = vadd.f32 %v402_v41, %v380_v7  ;;  %v409_v36 = vadd.f32 %v403_v1, %v381_v43  ;;  %v506_v2 = vadd.f32 %v2607_v14, %v482_v32 }
 0x1cc   : > { %v571_v50 = vsel %vm401_vm3, %v2738_v57, %v2684_v13  ;;  %v1174_v29 = vadd.f32 %v1166_v31, %v1150_v25  ;;  %v552_v44 = vadd.f32 %v547_v34, %v528_v33  ;;  %v572_v41 = vsel %vm401_vm3, %v2684_v13, %v2747_v55 }
 0x1cd   : > { %v2917_v63 = vpop.permute.xlu1 %879  ;;  %v2919_v8 = vpop.permute.xlu0 %1185  ;;  %v553_v5 = vadd.f32 %v548_v59, %v529_v23  ;;  %v433_v42 = vadd.f32 %v427_v61, %v408_v24  ;;  %v434_v27 = vadd.f32 %v428_v21, %v409_v36  ;;  %v530_v31 = vadd.f32 %v2644_v40, %v506_v2 }
 0x1ce   : > { %3335 = vst [vmem:[#allocation27_spill] sm:$0xff] %v2917_v63  ;;  %v2933_v9 = vsel %vm373_vm2, %v2813_v26, %v2917_v63  ;;  %1450 = vrot.lane.b32.xlu1 %v1444_v20, %s2113_s11  ;;  %v595_v20 = vsel %vm426_vm4, %v2749_v37, %v2822_v17  ;;  %v576_v4 = vadd.f32 %v2738_v57, %v552_v44  ;;  %v979_v59 = vmul.f32 0.0, %v2579_v58 }
 0x1cf   : > { %3336 = vst [vmem:[#allocation28_spill] sm:$0xff] %v2933_v9  ;;  %v577_v25 = vadd.f32 %v571_v50, %v553_v5  ;;  %v596_v40 = vsel %vm426_vm4, %v2822_v17, %v2759_v30  ;;  %v998_v30 = vsel %vm323_vm0, %v2766_v38, %v2712_v56  ;;  %v999_v61 = vsel %vm323_vm0, %v2712_v56, %v2775_v49 }
 0x1d0   : > { %v600_v43 = vadd.f32 %v2749_v37, %v576_v4  ;;  %v980_v21 = vmul.f32 %v2579_v58, %v2328_v52  ;;  %v1022_v33 = vsel %vm348_vm1, %v2777_v62, %v2846_v51  ;;  %v1003_v24 = vadd.f32 %v998_v30, %v979_v59 }
 0x1d1   : > { %v448_v63 = vpop.permute.xlu1 %447  ;;  %v2941_v9 = vpop.permute.xlu0 %1189  ;;  %v601_v1 = vadd.f32 %v595_v20, %v577_v25 }
 0x1d2   : > { %v452_v10 = vsel %vm451_vm5, %v2824_v11, %v448_v63  ;;  %v453_v14 = vsel %vm451_vm5, %v448_v63, %v2833_v18  ;;  %v2951_v32 = vadd.f32 %v2941_v9, %v1174_v29  ;;  %1454 = vrot.lane.b32.xlu1 %v1446_v28, %s2113_s11  ;;  %v554_v11 = vadd.f32 %v2691_v16, %v530_v31 }
 0x1d3   : > { %v458_v0 = vadd.f32 %v452_v10, %v433_v42  ;;  %v459_v22 = vadd.f32 %v453_v14, %v434_v27  ;;  %v1004_v38 = vadd.f32 %v999_v61, %v980_v21  ;;  %v1027_v36 = vadd.f32 %v1022_v33, %v1003_v24  ;;  %v3342_v61 = vld [vmem:[#allocation21_spill] sm:$0xff]  ;;  %v3343_v21 = vld [vmem:[#allocation23_spill] sm:$0xff] }
 0x1d4   : > { %v578_v13 = vadd.f32 %v572_v41, %v554_v11  ;;  %v981_v28 = vmul.f32 %v2579_v58, %v2322_v47  ;;  %v1148_v58 = vmul.f32 0.0, %v2562_v45  ;;  %v740_v33 = vsel %vm401_vm3, %v3343_v21, %v3342_v61 }
 0x1d5   : > { %v614_v18 = vpop.permute.xlu1 %613  ;;  %467 = vrot.lane.b32.xlu0 %v459_v22, %s2114_s14  ;;  %v2961_v54 = vpop.permute.xlu0 %1332  ;;  %v1028_v56 = vadd.f32 %v2853_v46, %v1004_v38  ;;  %v1149_v46 = vmul.f32 %v2562_v45, %v2328_v52  ;;  %v668_v52 = vsel %vm323_vm0, %v2591_v3, %v2653_v48  ;;  %v3038_v22 = vld [vmem:[%s2268_s19] sm:$0xff]  ;;  %v3337_v3 = vld [vmem:[#allocation10_spill] sm:$0xff] }
 0x1d6   : > { %v619_v57 = vsel %vm451_vm5, %v614_v18, %v2841_v15  ;;  %465 = vrot.lane.b32.xlu1 %v458_v0, %s2114_s14  ;;  %v624_v16 = vadd.f32 %v614_v18, %v600_v43  ;;  %v602_v7 = vadd.f32 %v596_v40, %v578_v13  ;;  %v1005_v51 = vadd.f32 %v2775_v49, %v981_v28  ;;  %v3340_v40 = vld [vmem:[#allocation14_spill] sm:$0xff] }
 0x1d7   : > { %v625_v55 = vadd.f32 %v619_v57, %v601_v1  ;;  %v1172_v49 = vadd.f32 %v2865_v12, %v1148_v58  ;;  %v1173_v10 = vadd.f32 %v2897_v60, %v1149_v46  ;;  %v649_v60 = vmul.f32 0.0, %v2512_v19  ;;  %v3338_v1 = vld [vmem:[#allocation11_spill] sm:$0xff] }
 0x1d8   : > { %v1029_v5 = vadd.f32 %v2790_v53, %v1005_v51  ;;  %v650_v4 = vmul.f32 %v3038_v22, %v2512_v19  ;;  %v692_v41 = vsel %vm348_vm1, %v3337_v3, %v2701_v39  ;;  %v693_v18 = vsel %vm348_vm1, %v2701_v39, %v3338_v1  ;;  %v3064_v39 = vld [vmem:[%s2268_s19 + $0x8] sm:$0xff] }
 0x1d9   : > { %v618_v34 = vpop.permute.xlu1 %617  ;;  %632 = vrot.lane.b32.xlu0 %v625_v55, %s2115_s15  ;;  %v2970_v63 = vpop.permute.xlu0 %898  ;;  %v673_v11 = vadd.f32 %v668_v52, %v649_v60  ;;  %v651_v30 = vmul.f32 %v3064_v39, %v2512_v19  ;;  %v3345_v51 = vld [vmem:[#allocation24_spill] sm:$0xff] }
 0x1da   : > { %v620_v37 = vsel %vm451_vm5, %v2841_v15, %v618_v34  ;;  %630 = vrot.lane.b32.xlu1 %v624_v16, %s2115_s15 }
 0x1db   : > { %v626_v17 = vadd.f32 %v620_v37, %v602_v7  ;;  %v697_v16 = vadd.f32 %v692_v41, %v673_v11  ;;  %v3341_v7 = vld [vmem:[#allocation15_spill] sm:$0xff]  ;;  %v675_v24 = vadd.f32 %v2600_v6, %v651_v30  ;;  %v3348_v30 = vld [vmem:[#allocation16_spill] sm:$0xff] }
 0x1dd   : > { %v2986_v15 = vpop.permute.xlu1 %760  ;;  %v2988_v23 = vpop.permute.xlu0 %902  ;;  %v699_v19 = vadd.f32 %v3338_v1, %v675_v24  ;;  %v3350_v24 = vld [vmem:[#allocation17_spill] sm:$0xff] }
 0x1de   : > { %634 = vrot.lane.b32.xlu1 %v626_v17, %s2115_s15 }
 0x1e1   : > { %v1041_v2 = vpop.permute.xlu1 %1040  ;;  %v2993_v50 = vpop.permute.xlu0 %784 }
 0x1e2   : > { %v1046_v29 = vsel %vm373_vm2, %v1041_v2, %v2886_v35  ;;  %v2997_v62 = vadd.f32 %v1041_v2, %v1027_v36 }
 0x1e3   : > { %v3000_v44 = vadd.f32 %v1046_v29, %v1028_v56  ;;  %v3344_v56 = vld [vmem:[#allocation25_spill] sm:$0xff] }
 0x1e4   : > { %v764_v2 = vsel %vm426_vm4, %v3344_v56, %v2986_v15 }
 0x1e5   : > { %v1045_v42 = vpop.permute.xlu1 %1044  ;;  %v3003_v27 = vpop.permute.xlu0 %1064 }
 0x1e6   : > { %v1047_v47 = vsel %vm373_vm2, %v2886_v35, %v1045_v42  ;;  %v723_v42 = vadd.f32 %v3341_v7, %v699_v19 }
 0x1e7   : > { %v3010_v20 = vadd.f32 %v1047_v47, %v1029_v5  ;;  %v741_v5 = vsel %vm401_vm3, %v3342_v61, %v3345_v51  ;;  %v3353_v51 = vld [vmem:[#allocation19_spill] sm:$0xff] }
 0x1e9   : > { %v1188_v14 = vpop.permute.xlu1 %1187  ;;  %v3014_v53 = vpop.permute.xlu0 %1068 }
 0x1ea   : > { %v1191_v31 = vsel %vm348_vm1, %v2919_v8, %v1188_v14  ;;  %v1192_v35 = vsel %vm348_vm1, %v1188_v14, %v2941_v9  ;;  %v669_v8 = vsel %vm323_vm0, %v2653_v48, %v2600_v6  ;;  %v3339_v48 = vld [vmem:[#allocation20_spill] sm:$0xff] }
 0x1eb   : > { %v3020_v25 = vadd.f32 %v1191_v31, %v1172_v49  ;;  %v3022_v0 = vadd.f32 %v1192_v35, %v1173_v10  ;;  %v674_v43 = vadd.f32 %v669_v8, %v650_v4  ;;  %v716_v57 = vsel %vm373_vm2, %v3340_v40, %v3339_v48  ;;  %v3346_v49 = vld [vmem:[#allocation26_spill] sm:$0xff] }
 0x1ec   : > { %v717_v34 = vsel %vm373_vm2, %v3339_v48, %v3341_v7  ;;  %v721_v59 = vadd.f32 %v716_v57, %v697_v16  ;;  %v765_v10 = vsel %vm426_vm4, %v2986_v15, %v3346_v49  ;;  %v747_v35 = vadd.f32 %v741_v5, %v723_v42 }
 0x1ed   : > { %v1331_v45 = vpop.permute.xlu1 %1330  ;;  %v3027_v12 = vpop.permute.xlu0 %1211  ;;  %v698_v17 = vadd.f32 %v693_v18, %v674_v43 }
 0x1ee   : > { %v3035_v9 = vsel %vm323_vm0, %v1331_v45, %v2961_v54  ;;  %v771_v45 = vadd.f32 %v765_v10, %v747_v35 }
 0x1ef   : > { %v722_v38 = vadd.f32 %v717_v34, %v698_v17  ;;  %v3347_v34 = vld [vmem:[#allocation12_spill] sm:$0xff] }
 0x1f0   : > { %v837_v17 = vsel %vm323_vm0, %v3348_v30, %v3347_v34 }
 0x1f1   : > { %v3051_v13 = vpop.permute.xlu1 %1334  ;;  %v3053_v55 = vpop.permute.xlu0 %1354  ;;  %v746_v29 = vadd.f32 %v740_v33, %v722_v38  ;;  %v838_v38 = vsel %vm323_vm0, %v3347_v34, %v3350_v24 }
 0x1f2   : > { %v3061_v37 = vsel %vm323_vm0, %v2961_v54, %v3051_v13  ;;  %v745_v54 = vadd.f32 %v3343_v21, %v721_v59  ;;  %v3349_v21 = vld [vmem:[#allocation9_spill] sm:$0xff]  ;;  %vm1304_vm0 = vcmask 375808  }
 0x1f3   : > { %v770_v47 = vadd.f32 %v764_v2, %v746_v29  ;;  %v818_v33 = vmul.f32 0.0, %v3349_v21  ;;  %v3352_v2 = vld [vmem:[#allocation18_spill] sm:$0xff] }
 0x1f4   : > { %v769_v6 = vadd.f32 %v3344_v56, %v745_v54  ;;  %v819_v54 = vmul.f32 %v3038_v22, %v3349_v21  ;;  %v3351_v56 = vld [vmem:[#allocation22_spill] sm:$0xff] }
 0x1f5   : > { %v3072_v36 = vpop.permute.xlu1 %900  ;;  %v3074_v28 = vpop.permute.xlu0 %1358  ;;  %v861_v19 = vsel %vm348_vm1, %v3352_v2, %v3351_v56  ;;  %v842_v29 = vadd.f32 %v837_v17, %v818_v33  ;;  %v862_v5 = vsel %vm348_vm1, %v3351_v56, %v3353_v51 }
 0x1f9   : > { %v783_v58 = vpop.permute.xlu1 %782  ;;  %v925_v46 = vpop.permute.xlu0 %924 }
 0x1fa   : > { %v788_v14 = vsel %vm451_vm5, %v783_v58, %v2993_v50  ;;  %v793_v31 = vadd.f32 %v783_v58, %v769_v6  ;;  %v843_v6 = vadd.f32 %v838_v38, %v819_v54  ;;  %v820_v58 = vmul.f32 %v3064_v39, %v3349_v21  ;;  %v3355_v21 = vld [vmem:[#allocation27_spill] sm:$0xff] }
 0x1fb   : > { %v794_v52 = vadd.f32 %v788_v14, %v770_v47  ;;  %v866_v47 = vadd.f32 %v861_v19, %v842_v29  ;;  %v1075_v19 = vadd.f32 %v3003_v27, %v2997_v62 }
 0x1fc   : > { %799 = vrot.lane.b32.xlu0 %v793_v31, %s2116_s17  ;;  %v867_v49 = vadd.f32 %v862_v5, %v843_v6  ;;  %v904_v31 = vsel %vm401_vm3, %v2970_v63, %v3072_v36  ;;  %v844_v35 = vadd.f32 %v3350_v24, %v820_v58 }
 0x1fd   : > { %v787_v60 = vpop.permute.xlu1 %786  ;;  %801 = vrot.lane.b32.xlu1 %v794_v52, %s2116_s17  ;;  %v1089_v8 = vpop.permute.xlu0 %1088  ;;  %v885_v14 = vadd.f32 %v2813_v26, %v866_v47  ;;  %v3354_v52 = vld [vmem:[#allocation28_spill] sm:$0xff]  ;;  %v905_v26 = vsel %vm401_vm3, %v3072_v36, %v2988_v23 }
 0x1fe   : > { %v789_v4 = vsel %vm451_vm5, %v2993_v50, %v787_v60  ;;  %v868_v34 = vadd.f32 %v3353_v51, %v844_v35  ;;  %v1099_v36 = vadd.f32 %v1089_v8, %v1075_v19 }
 0x1ff   : > { %v795_v3 = vadd.f32 %v789_v4, %v771_v45  ;;  %v886_v45 = vadd.f32 %v3354_v52, %v867_v49  ;;  %v909_v4 = vadd.f32 %v2970_v63, %v885_v14 }
 0x200   : > { %v887_v33 = vadd.f32 %v3355_v21, %v868_v34 }
 0x201   : > { %v1067_v41 = vpop.permute.xlu1 %1066  ;;  %803 = vrot.lane.b32.xlu0 %v795_v3, %s2116_s17  ;;  %v1093_v11 = vpop.permute.xlu0 %1092  ;;  %v910_v30 = vadd.f32 %v904_v31, %v886_v45 }
 0x202   : > { %v911_v29 = vadd.f32 %v905_v26, %v887_v33  ;;  %v1070_v5 = vsel %vm401_vm3, %v3003_v27, %v1067_v41  ;;  %v1071_v23 = vsel %vm401_vm3, %v1067_v41, %v3014_v53  ;;  %v3356_v33 = vld [vmem:[#allocation13_spill] sm:$0xff] }
 0x203   : > { %v1076_v47 = vadd.f32 %v1070_v5, %v3000_v44  ;;  %v1077_v27 = vadd.f32 %v1071_v23, %v3010_v20  ;;  %v269_v20 = vld [vmem:[%s3291_s2] sm:$0xff]  ;;  %v1319_v23 = vmul.f32 %v3064_v39, %v3356_v33 }
 0x205   : > { %v3093_v15 = vpop.permute.xlu1 %1209  ;;  %v3095_v1 = vpop.permute.xlu0 %1235 }
 0x206   : > { %v1215_v45 = vsel %vm373_vm2, %v3093_v15, %v3027_v12 }
 0x209   : > { %v3097_v18 = vpop.permute.xlu1 %1213  ;;  %v3099_v43 = vpop.permute.xlu0 %1378 }
 0x20d   : > { %v3101_v48 = vpop.permute.xlu1 %1356  ;;  %v3103_v40 = vpop.permute.xlu0 %1382 }
 0x211   : > { %v923_v57 = vpop.permute.xlu1 %922  ;;  %v949_v7 = vpop.permute.xlu0 %948 }
 0x212   : > { %v928_v3 = vsel %vm426_vm4, %v923_v57, %v925_v46  ;;  %v933_v17 = vadd.f32 %v923_v57, %v909_v4 }
 0x213   : > { %v934_v38 = vadd.f32 %v928_v3, %v910_v30  ;;  %v1221_v3 = vadd.f32 %v1215_v45, %v3022_v0  ;;  %v1216_v30 = vsel %vm373_vm2, %v3027_v12, %v3097_v18  ;;  %v1360_v0 = vsel %vm348_vm1, %v3053_v55, %v3101_v48 }
 0x215   : > { %v927_v16 = vpop.permute.xlu1 %926  ;;  %v1113_v59 = vpop.permute.xlu0 %1112 }
 0x216   : > { %v929_v56 = vsel %vm426_vm4, %v925_v46, %v927_v16  ;;  %v1123_v58 = vadd.f32 %v1113_v59, %v1099_v36 }
 0x217   : > { %v935_v57 = vadd.f32 %v929_v56, %v911_v29 }
 0x219   : > { %v1091_v50 = vpop.permute.xlu1 %1090  ;;  %v1117_v10 = vpop.permute.xlu0 %1116 }
 0x21a   : > { %v1094_v46 = vsel %vm426_vm4, %v1089_v8, %v1091_v50  ;;  %v1095_v16 = vsel %vm426_vm4, %v1091_v50, %v1093_v11 }
 0x21b   : > { %v1100_v41 = vadd.f32 %v1094_v46, %v1076_v47  ;;  %v1101_v14 = vadd.f32 %v1095_v16, %v1077_v27  ;;  %v1343_v46 = vadd.f32 %v3051_v13, %v1319_v23 }
 0x21d   : > { %v3108_v61 = vpop.permute.xlu1 %1233  ;;  %v1260_v24 = vpop.permute.xlu0 %1259 }
 0x221   : > { %v3122_v42 = vpop.permute.xlu1 %1237  ;;  %v3156_v49 = vpop.permute.xlu0 %1402 }
 0x225   : > { %v3132_v60 = vpop.permute.xlu1 %1380  ;;  %v1407_v44 = vpop.permute.xlu0 %1406 }
 0x226   : > { %v1385_v27 = vsel %vm373_vm2, %v3132_v60, %v3103_v40 }
 0x229   : > { %v947_v54 = vpop.permute.xlu1 %946  ;;  %v1284_v4 = vpop.permute.xlu0 %1283 }
 0x22a   : > { %v952_v2 = vsel %vm451_vm5, %v947_v54, %v949_v7  ;;  %v957_v63 = vadd.f32 %v947_v54, %v933_v17  ;;  %v1222_v54 = vadd.f32 %v1216_v30, %v2951_v32  ;;  %v1361_v32 = vsel %vm348_vm1, %v3101_v48, %v3074_v28 }
 0x22b   : > { %v958_v51 = vadd.f32 %v952_v2, %v934_v38  ;;  %v1317_v38 = vmul.f32 0.0, %v3356_v33 }
 0x22c   : > { %963 = vrot.lane.b32.xlu1 %v957_v63, %s2112_s13 }
 0x22d   : > { %v951_v6 = vpop.permute.xlu1 %950  ;;  %965 = vrot.lane.b32.xlu0 %v958_v51, %s2112_s13  ;;  %v1427_v56 = vpop.permute.xlu0 %1426 }
 0x22e   : > { %v953_v62 = vsel %vm451_vm5, %v949_v7, %v951_v6 }
 0x22f   : > { %v959_v53 = vadd.f32 %v953_v62, %v935_v57 }
 0x231   : > { %v1115_v31 = vpop.permute.xlu1 %1114  ;;  %967 = vrot.lane.b32.xlu1 %v959_v53, %s2112_s13  ;;  %1129 = vrot.lane.b32.xlu0 %v1123_v58, %s2117_s29  ;;  %v1431_v57 = vpop.permute.xlu0 %1430  ;;  %v1367_v58 = vadd.f32 %v3074_v28, %v1343_v46  ;;  %s1994_s13 = sshll.u32 %s2121_s28, 4  ;;  %s1995_s13 = int_to_ptr.vmem [resolvable:$false] %s1994_s13 }
 0x232   : > { %v1118_v8 = vsel %vm451_vm5, %v1113_v59, %v1115_v31  ;;  %v1119_v11 = vsel %vm451_vm5, %v1115_v31, %v1117_v10  ;;  %v1220_v59 = vadd.f32 %v3093_v15, %v3020_v25  ;;  %v1239_v10 = vsel %vm401_vm3, %v3108_v61, %v3095_v1 }
 0x233   : > { %v1124_v7 = vadd.f32 %v1118_v8, %v1100_v41  ;;  %v1125_v50 = vadd.f32 %v1119_v11, %v1101_v14  ;;  %v1245_v21 = vadd.f32 %v1239_v10, %v1221_v3  ;;  %v1240_v25 = vsel %vm401_vm3, %v3095_v1, %v3122_v42 }
 0x234   : > { %v1244_v26 = vadd.f32 %v3108_v61, %v1220_v59  ;;  %v1341_v61 = vadd.f32 %v3035_v9, %v1317_v38  ;;  %v1318_v1 = vmul.f32 %v3038_v22, %v3356_v33  ;;  %v1246_v42 = vadd.f32 %v1240_v25, %v1222_v54 }
 0x235   : > { %v1258_v35 = vpop.permute.xlu1 %1257  ;;  %1131 = vrot.lane.b32.xlu1 %v1124_v7, %s2117_s29  ;;  %1133 = vrot.lane.b32.xlu0 %v1125_v50, %s2117_s29  ;;  %v1391_v14 = vadd.f32 %v1385_v27, %v1367_v58  ;;  %v1453_v31 = vpop.permute.xlu0 %1452 }
 0x236   : > { %v1263_v17 = vsel %vm426_vm4, %v1258_v35, %v1260_v24  ;;  %v1268_v15 = vadd.f32 %v1258_v35, %v1244_v26  ;;  %v1365_v55 = vadd.f32 %v1360_v0, %v1341_v61  ;;  %v1342_v51 = vadd.f32 %v3061_v37, %v1318_v1 }
 0x237   : > { %v1269_v12 = vadd.f32 %v1263_v17, %v1245_v21  ;;  %v275_v21 = vlaneseq }
 0x238   : > { %v1366_v36 = vadd.f32 %v1361_v32, %v1342_v51  ;;  %v1389_v6 = vadd.f32 %v3099_v43, %v1365_v55 }
 0x239   : > { %v1262_v52 = vpop.permute.xlu1 %1261  ;;  %1484 = vperm.xlu1 %1950, %v269_v20   ;;  %v276_v38 = vand.u32 127, %v275_v21 }
 0x23a   : > { %v1264_v2 = vsel %vm426_vm4, %v1260_v24, %v1262_v52  ;;  %v1384_v24 = vsel %vm373_vm2, %v3099_v43, %v3132_v60  ;;  %v1413_v47 = vadd.f32 %v3156_v49, %v1389_v6 }
 0x23b   : > { %v1270_v9 = vadd.f32 %v1264_v2, %v1246_v42  ;;  %v1390_v16 = vadd.f32 %v1384_v24, %v1366_v36  ;;  %v278_v0 = vand.u32 15, %v276_v38 }
 0x23c   : > { %v1437_v43 = vadd.f32 %v1427_v56, %v1413_v47 }
 0x23d   : > { %v1405_v34 = vpop.permute.xlu1 %1404  ;;  %vm282_vm9 = vcmp.ge.s32.totalorder %v278_v0, 2  ;;  %vm280_vm10 = vcmp.ge.s32.totalorder %v278_v0, 3  ;;  %vm284_vm12 = vcmp.ge.s32.totalorder %v278_v0, 1  ;;  %vm286_vm1 = vcmp.lt.s32.totalorder %v278_v0, 15 }
 0x23e   : > { %v1408_v37 = vsel %vm401_vm3, %v3156_v49, %v1405_v34  ;;  %v1409_v41 = vsel %vm401_vm3, %v1405_v34, %v1407_v44  ;;  %v464_v44 = vpop.permute.xlu0 %463  ;;  %vm288_vm3 = vcmp.lt.s32.totalorder %v278_v0, 14 }
 0x23f   : > { %v1414_v53 = vadd.f32 %v1408_v37, %v1390_v16  ;;  %v1415_v50 = vadd.f32 %v1409_v41, %v1391_v14 }
 0x241   : > { %v1282_v18 = vpop.permute.xlu1 %1281 }
 0x242   : > { %v1287_v63 = vsel %vm451_vm5, %v1282_v18, %v1284_v4  ;;  %v1292_v19 = vadd.f32 %v1282_v18, %v1268_v15  ;;  %v277_v15 = vadd.s32 128, %v276_v38 }
 0x243   : > { %v1293_v29 = vadd.f32 %v1287_v63, %v1269_v12 }
 0x244   : > { %1298 = vrot.lane.b32.xlu0 %v1292_v19, %s2118_s8  ;;  %v279_v12 = vand.u32 15, %v277_v15 }
 0x245   : > { %v1286_v5 = vpop.permute.xlu1 %1285  ;;  %1300 = vrot.lane.b32.xlu1 %v1293_v29, %s2118_s8 }
 0x246   : > { %v1288_v22 = vsel %vm451_vm5, %v1284_v4, %v1286_v5  ;;  %vm283_vm11 = vcmp.ge.s32.totalorder %v279_v12, 2  ;;  %vm281_vm14 = vcmp.ge.s32.totalorder %v279_v12, 3  ;;  %vm285_vm15 = vcmp.ge.s32.totalorder %v279_v12, 1 }
 0x247   : > { %v1294_v48 = vadd.f32 %v1288_v22, %v1270_v9  ;;  %v468_v45 = vpop.permute.xlu0 %467  ;;  %vm287_vm2 = vcmp.lt.s32.totalorder %v279_v12, 15 }
 0x249   : > { %v1429_v62 = vpop.permute.xlu1 %1428  ;;  %1302 = vrot.lane.b32.xlu0 %v1294_v48, %s2118_s8  ;;  %s1701_s8 = sshll.u32 %s267_s18, 4  ;;  %s3247_s8 = int_to_ptr.vmem [resolvable:$true] %s1701_s8 }
 0x24a   : > { %v1432_v39 = vsel %vm426_vm4, %v1427_v56, %v1429_v62  ;;  %v1433_v11 = vsel %vm426_vm4, %v1429_v62, %v1431_v57  ;;  %p1997_p7 = scmp.lt.s32.totalorder %s3247_s8, %s1995_s13 }
 0x24b   : > { %v1438_v13 = vadd.f32 %v1432_v39, %v1414_v53  ;;  %v1439_v40 = vadd.f32 %v1433_v11, %v1415_v50  ;;  %v633_v59 = vpop.permute.xlu0 %632 }
 0x24d   : > { %v1451_v8 = vpop.permute.xlu1 %1450 }
 0x24e   : > { %v1456_v49 = vsel %vm451_vm5, %v1451_v8, %v1453_v31  ;;  %v1461_v7 = vadd.f32 %v1451_v8, %v1437_v43 }
 0x24f   : > { %v1462_v35 = vadd.f32 %v1456_v49, %v1438_v13 }
 0x250   : > { %1467 = vrot.lane.b32.xlu1 %v1461_v7, %s2119_s20 }
 0x251   : > { %v1455_v60 = vpop.permute.xlu1 %1454  ;;  %1469 = vrot.lane.b32.xlu0 %v1462_v35, %s2119_s20 }
 0x252   : > { %v1457_v28 = vsel %vm451_vm5, %v1453_v31, %v1455_v60  ;;  %vm289_vm5 = vcmp.lt.s32.totalorder %v279_v12, 14 }
 0x253   : > { %v1463_v20 = vadd.f32 %v1457_v28, %v1439_v40 }
 0x255   : > { %1471 = vrot.lane.b32.xlu1 %v1463_v20, %s2119_s20  ;;  %v466_v52 = vpop.permute.xlu1 %465 }
 0x256   : > { %v470_v63 = vsel %vm469_vm7, %v464_v44, %v466_v52  ;;  %v471_v29 = vsel %vm469_vm7, %v466_v52, %v468_v45  ;;  %vm290_vm7 = vcmp.lt.s32.totalorder %v278_v0, 13 }
 0x257   : > { %v474_v55 = vsel %vm280_vm10, %v470_v63, 0.0  ;;  %v475_v23 = vsel %vm281_vm14, %v471_v29, 0.0 }
 0x259   : > { %v631_v4 = vpop.permute.xlu1 %630 }
 0x25a   : > { %v637_v18 = vsel %vm636_vm6, %v631_v4, %v633_v59 }
 0x25b   : > { %v641_v42 = vsel %vm282_vm9, %v637_v18, 0.0 }
 0x25c   : > { %v643_v24 = vadd.f32 %v641_v42, %v474_v55 }
 0x25d   : > { %v635_v3 = vpop.permute.xlu1 %634 }
 0x25e   : > { %v638_v19 = vsel %vm636_vm6, %v633_v59, %v635_v3  ;;  %vm1473_vm6 = vcmask 367616  }
 0x25f   : > { %v642_v51 = vsel %vm283_vm11, %v638_v19, 0.0 }
 0x260   : > { %v644_v6 = vadd.f32 %v642_v51, %v475_v23 }
 0x26e   : > { %v800_v10 = vpop.permute.xlu0 %799 }
 0x26f   : > { %v802_v34 = vpop.permute.xlu1 %801 }
 0x270   : > { %v806_v1 = vsel %vm805_vm8, %v800_v10, %v802_v34 }
 0x271   : > { %v810_v9 = vsel %vm284_vm12, %v806_v1, 0.0 }
 0x272   : > { %v812_v37 = vadd.f32 %v810_v9, %v643_v24  ;;  %v270_v24 = vld [vmem:[%s3292_s3] sm:$0xff] }
 0x273   : > { %v804_v30 = vpop.permute.xlu0 %803 }
 0x274   : > { %v807_v32 = vsel %vm805_vm8, %v802_v34, %v804_v30  ;;  %vm1527_vm8 = vcmask 64512  }
 0x275   : > { %v811_v36 = vsel %vm285_vm15, %v807_v32, 0.0 }
 0x276   : > { %v813_v27 = vadd.f32 %v811_v36, %v644_v6 }
 0x29e   : > { %v964_v26 = vpop.permute.xlu1 %963 }
 0x29f   : > { %v966_v17 = vpop.permute.xlu0 %965 }
 0x2a0   : > { %v969_v57 = vsel %vm426_vm4, %v964_v26, %v966_v17 }
 0x2a1   : > { %v973_v39 = vadd.f32 %v969_v57, %v812_v37 }
 0x2a3   : > { %v968_v33 = vpop.permute.xlu1 %967  ;;  %v1130_v25 = vpop.permute.xlu0 %1129 }
 0x2a4   : > { %v970_v62 = vsel %vm426_vm4, %v966_v17, %v968_v33  ;;  %vm291_vm4 = vcmp.lt.s32.totalorder %v279_v12, 13  ;;  %v271_v12 = vld [vmem:[%s3293_s4] sm:$0xff] }
 0x2a5   : > { %v974_v31 = vadd.f32 %v970_v62, %v813_v27  ;;  %v272_v27 = vld [vmem:[%s3294_s5] sm:$0xff] }
 0x2a7   : > { %v1132_v54 = vpop.permute.xlu1 %1131  ;;  %v1134_v56 = vpop.permute.xlu0 %1133 }
 0x2a8   : > { %v1136_v22 = vsel %vm1135_vm13, %v1130_v25, %v1132_v54  ;;  %v1137_v46 = vsel %vm1135_vm13, %v1132_v54, %v1134_v56  ;;  %v2120_v56 = vmov 0.0  }
 0x2a9   : > { %v1140_v47 = vsel %vm286_vm1, %v1136_v22, 0.0  ;;  %v1141_v43 = vsel %vm287_vm2, %v1137_v46, 0.0  ;;  %1595 = vmatprep.mubr.f32.mxu0 %v2120_v56  ;;  %1677 = vmatprep.mubr.f32.mxu1 %v2120_v56 }
 0x2aa   : > { %v1142_v13 = vadd.f32 %v1140_v47, %v973_v39  ;;  %v1143_v7 = vadd.f32 %v1141_v43, %v974_v31  ;;  %v1608_v39 = vld [vmem:[%s2268_s19] sm:$0xff] }
 0x2b6   : > { %v1299_v2 = vpop.permute.xlu0 %1298 }
 0x2b8   : > { %v1485_v61 = vpop.permute.xlu1 %1484 }
 0x2bb   : > { %v1303_v48 = vpop.permute.xlu0 %1302 }
 0x2bc   : > { %v1301_v5 = vpop.permute.xlu1 %1300 }
 0x2bd   : > { %v1305_v16 = vsel %vm1304_vm0, %v1299_v2, %v1301_v5  ;;  %v1306_v58 = vsel %vm1304_vm0, %v1301_v5, %v1303_v48 }
 0x2be   : > { %v1309_v41 = vsel %vm288_vm3, %v1305_v16, 0.0  ;;  %v1310_v11 = vsel %vm289_vm5, %v1306_v58, 0.0  ;;  %v1609_v58 = vld [vmem:[%s2268_s19 + $0x8] sm:$0xff]  ;;  %s1990_s19 = scalar_lea.vmem %s3247_s8, 256 }
 0x2bf   : > { %v1311_v50 = vadd.f32 %v1309_v41, %v1142_v13  ;;  %v1312_v40 = vadd.f32 %v1310_v11, %v1143_v7  ;;  %p1991_p6 = scmp.ne.s32.totalorder %s3247_s8, %s1990_s19 }
 0x2c1   : > { %p1992_p12 = pnand %p1991_p6, %p3357_p11 }
 0x2c2   : > { %v1468_v53 = vpop.permute.xlu1 %1467 }
 0x2c3   : > { %v1470_v14 = vpop.permute.xlu0 %1469  ;;  %p1993_p13 = pneg %p1992_p12 }
 0x2c4   : > { %v1474_v8 = vsel %vm1473_vm6, %v1468_v53, %v1470_v14 }
 0x2c5   : > { %v1478_v49 = vsel %vm290_vm7, %v1474_v8, 0.0 }
 0x2c6   : > { %v1480_v60 = vadd.f32 %v1478_v49, %v1311_v50 }
 0x2c7   : > { %v1472_v35 = vpop.permute.xlu1 %1471 }
 0x2c8   : > { %v1475_v28 = vsel %vm1473_vm6, %v1470_v14, %v1472_v35  ;;  %v1487_v52 = vadd.f32 %v1485_v61, %v1480_v60 }
 0x2c9   : > { %v1479_v20 = vsel %vm291_vm4, %v1475_v28, 0.0 }
 0x2ca   : > { %v1481_v44 = vadd.f32 %v1479_v20, %v1312_v40 }
 0x2cc   : > { %v1488_v45 = vadd.f32 %v1485_v61, %v1481_v44 }
 0x2ce   : > { %v1489_v4 = vadd.f32 %v1488_v45, %v1487_v52 }
 0x2d0   : > { %1490 = vadd.xlane.f32.xlu0 %v1489_v4 }
 0x2e6   : > { %1524 = vperm.xlu0 %1951, %v271_v12  }
 0x35d   : > { %v1491_v59 = vpop.xlane.xlu0 %1490 }
 0x35e   : > { %v1492_v10 = vrot.slane %v1491_v59, 4 }
 0x360   : > { %v1493_v3 = vadd.f32 %v1492_v10, %v1491_v59 }
 0x362   : > { %v1494_v34 = vrot.slane %v1493_v3, 2 }
 0x364   : > { %v1495_v30 = vadd.f32 %v1494_v34, %v1493_v3 }
 0x365   : > { %v1525_v22 = vpop.permute.xlu0 %1524 }
 0x366   : > { %v1496_v26 = vrot.slane %v1495_v30, 1 }
 0x368   : > { %v1497_v17 = vadd.f32 %v1496_v26, %v1495_v30 }
 0x36a   : > { %1789 = vpush %v1497_v17 }
 0x39b   : > { %s1790_s7 = spop %1789 }
 0x39c   : > { %v1499_v21 = vstv %s1790_s7 }
 0x39d   : > { %v1501_v33 = vmul.f32 0.00048828125, %v1499_v21 }
 0x39f   : > { %v1502_v38 = vsub.f32 %v1487_v52, %v1501_v33  ;;  %v1503_v25 = vsub.f32 %v1488_v45, %v1501_v33 }
 0x3a1   : > { %v1504_v15 = vmul.f32 %v1502_v38, %v1502_v38  ;;  %v1505_v54 = vmul.f32 %v1503_v25, %v1503_v25 }
 0x3a3   : > { %v1506_v0 = vadd.f32 %v1505_v54, %v1504_v15 }
 0x3a5   : > { %1507 = vadd.xlane.f32.xlu1 %v1506_v0 }
 0x432   : > { %v1508_v18 = vpop.xlane.xlu1 %1507 }
 0x433   : > { %v1509_v61 = vrot.slane %v1508_v18, 4 }
 0x435   : > { %v1510_v2 = vadd.f32 %v1509_v61, %v1508_v18 }
 0x437   : > { %v1511_v63 = vrot.slane %v1510_v2, 2 }
 0x439   : > { %v1512_v19 = vadd.f32 %v1511_v63, %v1510_v2 }
 0x43b   : > { %v1513_v1 = vrot.slane %v1512_v19, 1 }
 0x43d   : > { %v1514_v42 = vadd.f32 %v1513_v1, %v1512_v19 }
 0x43f   : > { %1791 = vpush %v1514_v42 }
 0x470   : > { %s1792_s11 = spop %1791 }
 0x471   : > { %v1516_v29 = vstv %s1792_s11  ;;  %s1996_s11 = scalar_lea.vmem %s1995_s13, 512 }
 0x472   : > { %v1517_v32 = vmul.f32 0.00048828125, %v1516_v29  ;;  %p1998_p10 = scmp.lt.s32.totalorder %s1996_s11, %s1990_s19 }
 0x474   : > { %v1518_v55 = vadd.f32 1e-05, %v1517_v32  ;;  %p1999_p2 = por %p1998_p10, %p1997_p7 }
 0x476   : > { %1952 = vrsqrt.f32 %v1518_v55  ;;  %p2000_p4 = pnand %p1999_p2, %p1993_p13 }
 0x480   : > { %v1953_v51 = vpop.eup %1952 }
 0x481   : > { %v1521_v9 = vmul.f32 %v1953_v51, %v1503_v25  ;;  %v1520_v5 = vmul.f32 %v1953_v51, %v1502_v38 }
 0x483   : > { %1531 = vmatprep.subr.mxu0 %v1521_v9 }
 0x484   : > { %1532 = vmatpush1.msra.mxu0 %v1520_v5 }
 0x485   : > { %1780 = vmatmul.mubr.msk.f32.vlgmr.msra.gmra.mrb[0].mxu0 %vm1527_vm8, %v270_v24 }
 0x558   : > { %v1597_v23 = vpop.f32.mrb[0].mxu0 }
 0x559   : > { %v1598_v36 = vadd.f32 %v1597_v23, %v1525_v22  ;;  %v1599_v57 = vpop.f32.mrb[1].mxu0 }
 0x55a   : > { %v1600_v48 = vadd.f32 %v1599_v57, %v1525_v22 }
 0x55b   : > { %1954 = verf.f32 %v1598_v36 }
 0x55c   : > { %1956 = verf.f32 %v1600_v48 }
 0x565   : > { %v1955_v6 = vpop.eup %1954 }
 0x566   : > { %v1957_v37 = vpop.eup %1956  ;;  %v1604_v46 = vadd.f32 1.0, %v1955_v6 }
 0x567   : > { %v1605_v16 = vadd.f32 1.0, %v1957_v37 }
 0x568   : > { %v1606_v47 = vmul.f32 %v1604_v46, %v1598_v36 }
 0x569   : > { %v1607_v62 = vmul.f32 %v1605_v16, %v1600_v48 }
 0x56b   : > { %1613 = vmatprep.subr.mxu1 %v1607_v62 }
 0x56c   : > { %1614 = vmatpush1.msra.mxu1 %v1606_v47 }
 0x56d   : > { %1781 = vmatmul.mubr.msk.f32.vlgmr.msra.gmra.mrb[0].mxu1 %vm1527_vm8, %v272_v27 }
 0x640   : > { %v1679_v53 = vpop.f32.mrb[0].mxu1 }
 0x641   : > { %v1680_v43 = vadd.f32 %v1679_v53, %v1608_v39  ;;  %v1681_v41 = vpop.f32.mrb[1].mxu1 }
 0x642   : > { %v1682_v14 = vadd.f32 %v1681_v41, %v1609_v58 }
 0x643   : > { %1684 = vst [vmem:[%s267_s18] sm:$0xff] %v1680_v43 }
 0x644   : > { %1685 = vst [vmem:[%s267_s18 + $0x8] sm:$0xff] %v1682_v14 }
 0x645   : > { %2003 = shalt.err (!%p2000_p4)
}
 0x646   : > { %s2004_s26 = scalar_lea.hbm %s3245_s12, 256  ;;  %s2008_s17 = scalar_lea.hbm %s3295_s6, 512 }
 0x647   : > { %p2005_p5 = scmp.ne.s32.totalorder %s3245_s12, %s2004_s26  ;;  %p2009_p0 = scmp.lt.u32.totalorder %s3245_s12, %s3295_s6 }
 0x648   : > { %p2010_p1 = scmp.lt.u32.totalorder %s2008_s17, %s2004_s26  ;;  %p2012_p6 = scmp.lt.u32.totalorder %s2004_s26, %s3245_s12 }
 0x649   : > { %p2006_p8 = pnand %p2005_p5, %p3357_p11 }
 0x64a   : > { %p2011_p3 = por %p2010_p1, %p2009_p0 }
 0x64b   : > { %p2007_p9 = pneg %p2006_p8 }
 0x64c   : > { %p2013_p12 = por %p2012_p6, %p2011_p3 }
 0x64e   : > { %p2014_p13 = pnand %p2013_p12, %p2007_p9 }
 0x650   : > { %2017 = shalt.err (!%p2014_p13)
}
 0x651   : > { %1795 = dma.vmem_to_hbm [thread:$0]  (%p3357_p11), %s3247_s8, 256, %s3245_s12, %s1687_s25  }
 0x652 PF: > { %s1713_s18 = sand.u32 1, %s2044_s21   ;;  %p3358_p7 = scmp.ne.s32.totalorder %s3313_s10, 0 }
 0x653   : > { %p3359_p10 = scmp.ge.s32.totalorder %s2056_s24, 2  ;;  %s1714_s20 = scalar_lea.sflag [#allocation5], %s1713_s18 }
 0x655   : > { %p1802_p2 = pnand %p3359_p10, %p3358_p7 }
 0x657   : > { %2039 = dma.done.wait (!%p1802_p2), %s1714_s20, 256  }
 0x658   : > { %2041 = vsyncadd (!%p1802_p2), %s1714_s20, 4294967040  ;;  %p19_p4 = scmp.ge.s32.totalorder %s2182_s27, 4   ;;  %s3360_s21 = smov %s2048_s22 }
 0x659   : > { %s3361_s22 = smov %s2052_s23  ;;  %s3362_s23 = smov %s2194_s30 }
 0x65a   : > { %s3363_s24 = smov %s2182_s27  ;;  %21 = sbr.rel (!%p19_p4) target bundleno = 5 (0x5), region = 89 }
 0x661   :  { %1719 = vsyncpa [#allocation4], 1 }
 0x662   :  { %1721 = vsyncpa [#allocation4 + $0x1], 1 }
 0x663   :  { %1722 = vsyncpa [#allocation5], 1 }
 0x664   :  { %1724 = vsyncpa [#allocation5 + $0x1], 1 }

</bundles_post_ra>
